<compile_context>
chip_gen: v7x
topology: tpu7x:2x2x1
jax: 0.10.0
libtpu: 0.0.40
codegen_flags: <defaults>
</compile_context>

<pallas_src>
import math

import jax
import jax.numpy as jnp
from jax.experimental import pallas as pl
from jax.experimental.pallas import tpu as pltpu

T_EMB = 16       # t_emb_size
X_EMB = 32       # x_emb_size
G = 4            # batch rows packed per vreg row: 128 lanes / 32-wide hidden
LN_EPS = 1e-5    # nn.LayerNorm default eps
MAX_DIM = 10000.0


def _round_up(n, m):
    return ((n + m - 1) // m) * m


# -----------------------------------------------------------------------------
# Kernel
# -----------------------------------------------------------------------------
def simplenet2_kernel(xt_ref, efreq_ref, phase_ref, w1a_ref, w1b_ref,
                      vec_ref, rw_ref, avg_ref, head_ref, bout_ref, drift_ref):
    f32 = jnp.float32
    cd = w1a_ref.dtype                       # matmul-operand dtype (bf16 or f32)

    xt = xt_ref[...]                         # [TBP, 12] f32: 4 packed (x0,x1,t)

    # Fourier features for all 4 packed rows at once: efreq routes each t lane
    # to its group's 16 fourier lanes with the frequency folded in; the +pi/2
    # phase on the second half turns sin into cos.  Kept f32 end-to-end.
    ang = jnp.dot(xt, efreq_ref[...], preferred_element_type=f32) + phase_ref[...]
    t_four = jnp.sin(ang)                    # [TBP, 64]

    # Fused (x_embed | t_embed | main-body Linear), block-diagonal over groups.
    h = (jnp.dot(xt.astype(cd), w1a_ref[...], preferred_element_type=f32)
         + jnp.dot(t_four.astype(cd), w1b_ref[...], preferred_element_type=f32)
         + vec_ref[0:1, :])                  # [TBP, 128]

    avg = avg_ref[...]                       # [128,128] block-diag 1/32 averaging

    def ln_elu(z, gamma_row, beta_row):
        # Per-32-lane-group LayerNorm with mean/var on the MXU (f32 stats).
        mu = jnp.dot(z, avg, preferred_element_type=f32)
        d = z - mu
        var = jnp.dot(d * d, avg, preferred_element_type=f32)
        zn = (d * jax.lax.rsqrt(var + LN_EPS)
              * vec_ref[gamma_row:gamma_row + 1, :]
              + vec_ref[beta_row:beta_row + 1, :])
        # ELU(alpha=1): clamp exp's argument so large positives never hit +inf.
        return jnp.where(zn > 0, zn, jnp.exp(jnp.minimum(zn, 0.0)) - 1.0)

    # ---- ResBlock 1 ----
    z = jnp.dot(h.astype(cd), rw_ref[0], preferred_element_type=f32) + vec_ref[1:2, :]
    z = ln_elu(z, 2, 3)
    h = h + jnp.dot(z.astype(cd), rw_ref[1], preferred_element_type=f32) + vec_ref[4:5, :]

    # ---- ResBlock 2 with the drift head folded into its second Linear ----
    z = jnp.dot(h.astype(cd), rw_ref[2], preferred_element_type=f32) + vec_ref[5:6, :]
    z = ln_elu(z, 6, 7)
    drift_ref[...] = (
        jnp.dot(h.astype(cd), head_ref[0], preferred_element_type=f32)
        + jnp.dot(z.astype(cd), head_ref[1], preferred_element_type=f32)
        + bout_ref[...])                     # [TBP, 8] = 4 packed (d0,d1) pairs/row
    # TODO(synk): predict_log_var=False path only; log_var_head would be one more
    # identical folded Linear(32, 2) on the same activations.


# -----------------------------------------------------------------------------
# Parameters
# -----------------------------------------------------------------------------
def init_params(key):
    """Raw (unfused) params, PyTorch-style uniform(-1/sqrt(fan_in), +), W as [in,out]."""
    def linear(k, fan_in, fan_out):
        k1, k2 = jax.random.split(k)
        bound = 1.0 / math.sqrt(fan_in)
        w = jax.random.uniform(k1, (fan_in, fan_out), jnp.float32, -bound, bound)
        b = jax.random.uniform(k2, (1, fan_out), jnp.float32, -bound, bound)
        return w, b

    keys = jax.random.split(key, 8)
    wx, bx = linear(keys[0], 2, X_EMB)
    wt, bt = linear(keys[1], T_EMB, X_EMB)
    wm, bm = linear(keys[2], 2 * X_EMB, X_EMB)
    r1wa, r1ba = linear(keys[3], X_EMB, X_EMB)
    r1wb, r1bb = linear(keys[4], X_EMB, X_EMB)
    r2wa, r2ba = linear(keys[5], X_EMB, X_EMB)
    r2wb, r2bb = linear(keys[6], X_EMB, X_EMB)
    wd, bd = linear(keys[7], X_EMB, 2)
    ones = jnp.ones((1, X_EMB), jnp.float32)     # LayerNorm gamma
    zeros = jnp.zeros((1, X_EMB), jnp.float32)   # LayerNorm beta
    return [wx, bx, wt, bt, wm, bm,
            r1wa, r1ba, ones, zeros, r1wb, r1bb,
            r2wa, r2ba, ones, zeros, r2wb, r2bb,
            wd, bd]


def pack_params(params, compute_dtype=jnp.bfloat16):
    """Wrapper-side algebraic fusion + 4-group lane packing + operand coalescing.

    All folds are exact in f32; bf16 rounding (when compute_dtype=bf16) only
    affects the matmul operands, not the LayerNorm statistics or biases.
    """
    (wx, bx, wt, bt, wm, bm,
     r1wa, r1ba, r1g, r1be, r1wb, r1bb,
     r2wa, r2ba, r2g, r2be, r2wb, r2bb,
     wd, bd) = params

    # Exact algebraic folds.
    wm_x, wm_t = wm[:X_EMB], wm[X_EMB:]
    w1a = wx @ wm_x                       # [2, 32]
    w1b = wt @ wm_t                       # [16, 32]
    b1 = bx @ wm_x + bt @ wm_t + bm       # [1, 32]
    wdh = wd                              # [32, 2]  (skip path h2 @ wd)
    wdz = r2wb @ wd                       # [32, 2]  (folded 2nd Linear of RB2)
    b_out = r2bb @ wd + bd                # [1, 2]

    # Fourier frequency/phase tables (sin+cos as one sin via +pi/2 phase).
    half = T_EMB // 2
    max_log_dim = math.log(MAX_DIM) / (half - 1)
    base = jnp.exp(jnp.arange(half, dtype=jnp.float32) * (-max_log_dim))
    freq16 = jnp.concatenate([base, base])                                   # [16]
    phase16 = jnp.concatenate([jnp.zeros((half,), jnp.float32),
                               jnp.full((half,), jnp.pi / 2, jnp.float32)])  # [16]

    def block_diag(m, reps):
        r, c = m.shape
        out = jnp.zeros((reps * r, reps * c), jnp.float32)
        for g in range(reps):
            out = out.at[g * r:(g + 1) * r, g * c:(g + 1) * c].set(m)
        return out

    def tile_lanes(v, reps):
        return jnp.tile(jnp.asarray(v, jnp.float32).reshape(1, -1), (1, reps))

    # t-lane -> per-group fourier-angle selection matrix with freq folded in.
    efreq = jnp.zeros((3 * G, T_EMB * G), jnp.float32)
    for g in range(G):
        efreq = efreq.at[3 * g + 2, T_EMB * g:T_EMB * (g + 1)].set(freq16)   # [12,64]
    phase_t = tile_lanes(phase16, G)                                          # [1,64]

    # x-lanes -> fused first Linear (t lane rows stay zero).
    w1a_pk = jnp.zeros((3 * G, X_EMB * G), jnp.float32)
    for g in range(G):
        w1a_pk = w1a_pk.at[3 * g:3 * g + 2, X_EMB * g:X_EMB * (g + 1)].set(w1a)  # [12,128]
    w1b_pk = block_diag(w1b, G)                                               # [64,128]

    rw = jnp.stack([block_diag(r1wa, G),
                    block_diag(r1wb, G),
                    block_diag(r2wa, G)])                                     # [3,128,128]
    head = jnp.stack([block_diag(wdh, G), block_diag(wdz, G)])                # [2,128,8]
    avg = block_diag(jnp.full((X_EMB, X_EMB), 1.0 / X_EMB, jnp.float32), G)   # [128,128]

    vecs = jnp.concatenate([
        tile_lanes(b1, G), tile_lanes(r1ba, G), tile_lanes(r1g, G), tile_lanes(r1be, G),
        tile_lanes(r1bb, G), tile_lanes(r2ba, G), tile_lanes(r2g, G), tile_lanes(r2be, G)],
        axis=0)                                                               # [8,128] f32
    bout_t = tile_lanes(b_out, G)                                             # [1,8]  f32

    cd = compute_dtype
    return [efreq, phase_t,
            w1a_pk.astype(cd), w1b_pk.astype(cd),
            vecs, rw.astype(cd), avg,
            head.astype(cd), bout_t]


# -----------------------------------------------------------------------------
# Wrapper
# -----------------------------------------------------------------------------
def simplenet2_forward(x, t, params, *, tile_b=4096, compute_dtype=jnp.bfloat16):
    B = x.shape[0]
    xt = jnp.concatenate(
        [x.astype(jnp.float32), t.reshape(B, 1).astype(jnp.float32)], axis=-1)  # [B,3]

    # Batch tile: multiple of 32 (= 8 sublanes x 4 packed rows per vreg row).
    # Prefer >= 2 grid steps so v7x's two TensorCores both get work; cap at the
    # padded batch so tiny batches stay one small tile.
    tile_b = max(32, (int(tile_b) // 32) * 32)
    if B > 32:
        tile_b = min(tile_b, _round_up(-(-B // 2), 32))
    tile_b = min(tile_b, _round_up(B, 32))
    b_pad = _round_up(B, tile_b)
    n_tiles = b_pad // tile_b
    tbp = tile_b // G

    if b_pad != B:
        # Zero padding rows: LayerNorm on them hits var=0 but rsqrt(0 + eps) is
        # finite, and the rows are sliced off below.  Do not remove the eps.
        xt = jnp.pad(xt, ((0, b_pad - B), (0, 0)))
    xt_p = xt.reshape(b_pad // G, 3 * G)          # [B/4, 12] lane-packed (free reshape)

    packed = pack_params(params, compute_dtype)

    def resident(p):  # whole array VMEM-resident; same block every grid step
        return pl.BlockSpec(p.shape, lambda i: (0,) * p.ndim)

    in_specs = ([pl.BlockSpec((tbp, 3 * G), lambda i: (i, 0))]
                + [resident(p) for p in packed])
    out_specs = pl.BlockSpec((tbp, 2 * G), lambda i: (i, 0))

    drift_p = pl.pallas_call(
        simplenet2_kernel,
        out_shape=jax.ShapeDtypeStruct((b_pad // G, 2 * G), jnp.float32),
        grid=(n_tiles,),
        in_specs=in_specs,
        out_specs=out_specs,
        compiler_params=pltpu.CompilerParams(
            dimension_semantics=("parallel",),        # megacore sharding on v7x
            # ~10 live [tile_b/4, 128] f32 intermediates per core at tile_b=8192
            # is ~10 MiB; raise this if tile_b is pushed past ~16K (v7x: 64 MiB).
            vmem_limit_bytes=32 * 1024 * 1024),
    )(xt_p, *packed)

    drift = drift_p.reshape(b_pad, 2)[:B]          # unpack lanes (free reshape) + crop
    return {"drift": drift}


# -----------------------------------------------------------------------------
# Pure-JAX f32 reference mirroring the PyTorch forward (unfused)
# -----------------------------------------------------------------------------
def simplenet2_reference(x, t, params):
    (wx, bx, wt, bt, wm, bm,
     r1wa, r1ba, r1g, r1be, r1wb, r1bb,
     r2wa, r2ba, r2g, r2be, r2wb, r2bb,
     wd, bd) = params
    half = T_EMB // 2
    max_log_dim = math.log(MAX_DIM) / (half - 1)
    freqs = jnp.exp(jnp.arange(half, dtype=jnp.float32) * (-max_log_dim))
    ang = t[:, None] * freqs[None, :]
    t_four = jnp.concatenate([jnp.sin(ang), jnp.cos(ang)], axis=-1)

    x_emb = x @ wx + bx
    t_emb = t_four @ wt + bt
    h = jnp.concatenate([x_emb, t_emb], axis=-1) @ wm + bm

    def resblock(h, wa, ba, g, be, wb, bb):
        z = h @ wa + ba
        mu = jnp.mean(z, axis=-1, keepdims=True)
        var = jnp.mean((z - mu) ** 2, axis=-1, keepdims=True)
        z = (z - mu) / jnp.sqrt(var + LN_EPS) * g + be
        z = jnp.where(z > 0, z, jnp.expm1(z))
        return h + (z @ wb + bb)

    h = resblock(h, r1wa, r1ba, r1g, r1be, r1wb, r1bb)
    h = resblock(h, r2wa, r2ba, r2g, r2be, r2wb, r2bb)
    return h @ wd + bd


if __name__ == "__main__":
    key = jax.random.PRNGKey(0)
    kx, kt, kp = jax.random.split(key, 3)

    B = 200  # deliberately not a multiple of the tile -> exercises padding path
    x = jax.random.normal(kx, (B, 2), jnp.float32)
    t = jax.random.uniform(kt, (B,), jnp.float32)
    params = init_params(kp)

    ref = simplenet2_reference(x, t, params)

    # f32-operand path: the fusion/packing is pure algebra, so this is near-exact;
    # tolerance left at 2e-3 only to cover reduced-precision f32 MXU pass modes on
    # some generations (any packing/fold bug would show up as O(1) error).
    out32 = simplenet2_forward(x, t, params, tile_b=128, compute_dtype=jnp.float32)
    d32 = jax.block_until_ready(out32["drift"])
    assert d32.shape == (B, 2)
    assert jnp.allclose(d32, ref, atol=2e-3, rtol=2e-3), "f32 mismatch vs reference"

    # Default bf16-operand / f32-accumulate path: bf16 rounding of the (exactly
    # folded) weights differs from the reference's two-matmul chains, hence the
    # loose 0.1 abs bound -- do not tighten without revisiting the fold math.
    outbf = simplenet2_forward(x, t, params)
    dbf = jax.block_until_ready(outbf["drift"])
    assert dbf.shape == (B, 2)
    assert float(jnp.max(jnp.abs(dbf - ref))) < 0.1, "bf16 path drifted too far"

    print("KERNEL_OK")
</pallas_src>

<mosaic_0001>
module attributes {stable_mosaic.version = 11 : i64} {
  func.func @simplenet2_kernel(%arg0: i32, %arg1: memref<32x12xf32, #tpu.memory_space<vmem>>, %arg2: memref<12x64xf32, #tpu.memory_space<vmem>>, %arg3: memref<1x64xf32, #tpu.memory_space<vmem>>, %arg4: memref<12x128xf32, #tpu.memory_space<vmem>>, %arg5: memref<64x128xf32, #tpu.memory_space<vmem>>, %arg6: memref<8x128xf32, #tpu.memory_space<vmem>>, %arg7: memref<3x128x128xf32, #tpu.memory_space<vmem>>, %arg8: memref<128x128xf32, #tpu.memory_space<vmem>>, %arg9: memref<2x128x8xf32, #tpu.memory_space<vmem>>, %arg10: memref<1x8xf32, #tpu.memory_space<vmem>>, %arg11: memref<32x8xf32, #tpu.memory_space<vmem>>) attributes {dimension_semantics = [#tpu.dimension_semantics<parallel>], iteration_bounds = array<i64: 2>, scalar_prefetch = 0 : i64, scratch_operands = 0 : i64, tpu.core_type = #tpu.core_type<tc>, window_params = [{transform_indices = @transform_0, window_bounds = array<i64: 32, 12>}, {pipeline_mode = #tpu.pipeline_mode<synchronous>, transform_indices = @transform_1, window_bounds = array<i64: 12, 64>}, {pipeline_mode = #tpu.pipeline_mode<synchronous>, transform_indices = @transform_2, window_bounds = array<i64: 1, 64>}, {pipeline_mode = #tpu.pipeline_mode<synchronous>, transform_indices = @transform_3, window_bounds = array<i64: 12, 128>}, {pipeline_mode = #tpu.pipeline_mode<synchronous>, transform_indices = @transform_4, window_bounds = array<i64: 64, 128>}, {pipeline_mode = #tpu.pipeline_mode<synchronous>, transform_indices = @transform_5, window_bounds = array<i64: 8, 128>}, {pipeline_mode = #tpu.pipeline_mode<synchronous>, transform_indices = @transform_6, window_bounds = array<i64: 3, 128, 128>}, {pipeline_mode = #tpu.pipeline_mode<synchronous>, transform_indices = @transform_7, window_bounds = array<i64: 128, 128>}, {pipeline_mode = #tpu.pipeline_mode<synchronous>, transform_indices = @transform_8, window_bounds = array<i64: 2, 128, 8>}, {pipeline_mode = #tpu.pipeline_mode<synchronous>, transform_indices = @transform_9, window_bounds = array<i64: 1, 8>}, {transform_indices = @transform_10, window_bounds = array<i64: 32, 8>}]} {
    %c0 = arith.constant 0 : index
    %c0_0 = arith.constant 0 : index
    %0 = vector.load %arg1[%c0, %c0_0] : memref<32x12xf32, #tpu.memory_space<vmem>>, vector<32x12xf32>
    %c0_1 = arith.constant 0 : index
    %c0_2 = arith.constant 0 : index
    %1 = vector.load %arg2[%c0_1, %c0_2] : memref<12x64xf32, #tpu.memory_space<vmem>>, vector<12x64xf32>
    %cst = arith.constant dense<0.000000e+00> : vector<32x64xf32>
    %2 = tpu.matmul %0, %1, %cst {dimension_numbers = #tpu.dot_dimension_numbers<[1], [0], [0], [1], [0, 0, 1, 1], [], []>} : vector<32x12xf32>, vector<12x64xf32>, vector<32x64xf32> -> vector<32x64xf32>
    %c0_3 = arith.constant 0 : index
    %c0_4 = arith.constant 0 : index
    %3 = vector.load %arg3[%c0_3, %c0_4] : memref<1x64xf32, #tpu.memory_space<vmem>>, vector<1x64xf32>
    %4 = vector.broadcast %3 : vector<1x64xf32> to vector<32x64xf32>
    %5 = arith.addf %2, %4 : vector<32x64xf32>
    %6 = math.sin %5 : vector<32x64xf32>
    %c0_5 = arith.constant 0 : index
    %c0_6 = arith.constant 0 : index
    %7 = vector.load %arg4[%c0_5, %c0_6] : memref<12x128xf32, #tpu.memory_space<vmem>>, vector<12x128xf32>
    %cst_7 = arith.constant dense<0.000000e+00> : vector<32x128xf32>
    %8 = tpu.matmul %0, %7, %cst_7 {dimension_numbers = #tpu.dot_dimension_numbers<[1], [0], [0], [1], [0, 0, 1, 1], [], []>} : vector<32x12xf32>, vector<12x128xf32>, vector<32x128xf32> -> vector<32x128xf32>
    %c0_8 = arith.constant 0 : index
    %c0_9 = arith.constant 0 : index
    %9 = vector.load %arg5[%c0_8, %c0_9] : memref<64x128xf32, #tpu.memory_space<vmem>>, vector<64x128xf32>
    %cst_10 = arith.constant dense<0.000000e+00> : vector<32x128xf32>
    %10 = tpu.matmul %6, %9, %cst_10 {dimension_numbers = #tpu.dot_dimension_numbers<[1], [0], [0], [1], [0, 0, 1, 1], [], []>} : vector<32x64xf32>, vector<64x128xf32>, vector<32x128xf32> -> vector<32x128xf32>
    %11 = arith.addf %8, %10 : vector<32x128xf32>
    %c0_11 = arith.constant 0 : index
    %c0_12 = arith.constant 0 : index
    %12 = vector.load %arg6[%c0_11, %c0_12] : memref<8x128xf32, #tpu.memory_space<vmem>>, vector<1x128xf32>
    %13 = vector.broadcast %12 : vector<1x128xf32> to vector<32x128xf32>
    %14 = arith.addf %11, %13 : vector<32x128xf32>
    %c0_13 = arith.constant 0 : index
    %c0_14 = arith.constant 0 : index
    %15 = vector.load %arg8[%c0_13, %c0_14] : memref<128x128xf32, #tpu.memory_space<vmem>>, vector<128x128xf32>
    %c0_15 = arith.constant 0 : index
    %c0_16 = arith.constant 0 : index
    %c0_17 = arith.constant 0 : index
    %16 = vector.load %arg7[%c0_15, %c0_16, %c0_17] : memref<3x128x128xf32, #tpu.memory_space<vmem>>, vector<1x128x128xf32>
    %17 = vector.shape_cast %16 : vector<1x128x128xf32> to vector<128x128xf32>
    %cst_18 = arith.constant dense<0.000000e+00> : vector<32x128xf32>
    %18 = tpu.matmul %14, %17, %cst_18 {dimension_numbers = #tpu.dot_dimension_numbers<[1], [0], [0], [1], [0, 0, 1, 1], [], []>} : vector<32x128xf32>, vector<128x128xf32>, vector<32x128xf32> -> vector<32x128xf32>
    %c1 = arith.constant 1 : index
    %c0_19 = arith.constant 0 : index
    %19 = vector.load %arg6[%c1, %c0_19] : memref<8x128xf32, #tpu.memory_space<vmem>>, vector<1x128xf32>
    %20 = vector.broadcast %19 : vector<1x128xf32> to vector<32x128xf32>
    %21 = arith.addf %18, %20 : vector<32x128xf32>
    %cst_20 = arith.constant dense<0.000000e+00> : vector<32x128xf32>
    %22 = tpu.matmul %21, %15, %cst_20 {dimension_numbers = #tpu.dot_dimension_numbers<[1], [0], [0], [1], [0, 0, 1, 1], [], []>} : vector<32x128xf32>, vector<128x128xf32>, vector<32x128xf32> -> vector<32x128xf32>
    %23 = arith.subf %21, %22 : vector<32x128xf32>
    %24 = arith.mulf %23, %23 : vector<32x128xf32>
    %cst_21 = arith.constant dense<0.000000e+00> : vector<32x128xf32>
    %25 = tpu.matmul %24, %15, %cst_21 {dimension_numbers = #tpu.dot_dimension_numbers<[1], [0], [0], [1], [0, 0, 1, 1], [], []>} : vector<32x128xf32>, vector<128x128xf32>, vector<32x128xf32> -> vector<32x128xf32>
    %cst_22 = arith.constant 9.99999974E-6 : f32
    %26 = vector.broadcast %cst_22 : f32 to vector<32x128xf32>
    %27 = arith.addf %25, %26 : vector<32x128xf32>
    %28 = math.rsqrt %27 : vector<32x128xf32>
    %29 = arith.mulf %23, %28 : vector<32x128xf32>
    %c2 = arith.constant 2 : index
    %c0_23 = arith.constant 0 : index
    %30 = vector.load %arg6[%c2, %c0_23] : memref<8x128xf32, #tpu.memory_space<vmem>>, vector<1x128xf32>
    %31 = vector.broadcast %30 : vector<1x128xf32> to vector<32x128xf32>
    %32 = arith.mulf %29, %31 : vector<32x128xf32>
    %c3 = arith.constant 3 : index
    %c0_24 = arith.constant 0 : index
    %33 = vector.load %arg6[%c3, %c0_24] : memref<8x128xf32, #tpu.memory_space<vmem>>, vector<1x128xf32>
    %34 = vector.broadcast %33 : vector<1x128xf32> to vector<32x128xf32>
    %35 = arith.addf %32, %34 : vector<32x128xf32>
    %cst_25 = arith.constant 0.000000e+00 : f32
    %36 = vector.broadcast %cst_25 : f32 to vector<32x128xf32>
    %37 = arith.cmpf ogt, %35, %36 : vector<32x128xf32>
    %cst_26 = arith.constant 0.000000e+00 : f32
    %38 = vector.broadcast %cst_26 : f32 to vector<32x128xf32>
    %39 = arith.minimumf %35, %38 : vector<32x128xf32>
    %40 = math.exp %39 : vector<32x128xf32>
    %cst_27 = arith.constant 1.000000e+00 : f32
    %41 = vector.broadcast %cst_27 : f32 to vector<32x128xf32>
    %42 = arith.subf %40, %41 : vector<32x128xf32>
    %43 = arith.select %37, %35, %42 : vector<32x128xi1>, vector<32x128xf32>
    %c1_28 = arith.constant 1 : index
    %c0_29 = arith.constant 0 : index
    %c0_30 = arith.constant 0 : index
    %44 = vector.load %arg7[%c1_28, %c0_29, %c0_30] : memref<3x128x128xf32, #tpu.memory_space<vmem>>, vector<1x128x128xf32>
    %45 = vector.shape_cast %44 : vector<1x128x128xf32> to vector<128x128xf32>
    %cst_31 = arith.constant dense<0.000000e+00> : vector<32x128xf32>
    %46 = tpu.matmul %43, %45, %cst_31 {dimension_numbers = #tpu.dot_dimension_numbers<[1], [0], [0], [1], [0, 0, 1, 1], [], []>} : vector<32x128xf32>, vector<128x128xf32>, vector<32x128xf32> -> vector<32x128xf32>
    %47 = arith.addf %14, %46 : vector<32x128xf32>
    %c4 = arith.constant 4 : index
    %c0_32 = arith.constant 0 : index
    %48 = vector.load %arg6[%c4, %c0_32] : memref<8x128xf32, #tpu.memory_space<vmem>>, vector<1x128xf32>
    %49 = vector.broadcast %48 : vector<1x128xf32> to vector<32x128xf32>
    %50 = arith.addf %47, %49 : vector<32x128xf32>
    %c2_33 = arith.constant 2 : index
    %c0_34 = arith.constant 0 : index
    %c0_35 = arith.constant 0 : index
    %51 = vector.load %arg7[%c2_33, %c0_34, %c0_35] : memref<3x128x128xf32, #tpu.memory_space<vmem>>, vector<1x128x128xf32>
    %52 = vector.shape_cast %51 : vector<1x128x128xf32> to vector<128x128xf32>
    %cst_36 = arith.constant dense<0.000000e+00> : vector<32x128xf32>
    %53 = tpu.matmul %50, %52, %cst_36 {dimension_numbers = #tpu.dot_dimension_numbers<[1], [0], [0], [1], [0, 0, 1, 1], [], []>} : vector<32x128xf32>, vector<128x128xf32>, vector<32x128xf32> -> vector<32x128xf32>
    %c5 = arith.constant 5 : index
    %c0_37 = arith.constant 0 : index
    %54 = vector.load %arg6[%c5, %c0_37] : memref<8x128xf32, #tpu.memory_space<vmem>>, vector<1x128xf32>
    %55 = vector.broadcast %54 : vector<1x128xf32> to vector<32x128xf32>
    %56 = arith.addf %53, %55 : vector<32x128xf32>
    %cst_38 = arith.constant dense<0.000000e+00> : vector<32x128xf32>
    %57 = tpu.matmul %56, %15, %cst_38 {dimension_numbers = #tpu.dot_dimension_numbers<[1], [0], [0], [1], [0, 0, 1, 1], [], []>} : vector<32x128xf32>, vector<128x128xf32>, vector<32x128xf32> -> vector<32x128xf32>
    %58 = arith.subf %56, %57 : vector<32x128xf32>
    %59 = arith.mulf %58, %58 : vector<32x128xf32>
    %cst_39 = arith.constant dense<0.000000e+00> : vector<32x128xf32>
    %60 = tpu.matmul %59, %15, %cst_39 {dimension_numbers = #tpu.dot_dimension_numbers<[1], [0], [0], [1], [0, 0, 1, 1], [], []>} : vector<32x128xf32>, vector<128x128xf32>, vector<32x128xf32> -> vector<32x128xf32>
    %cst_40 = arith.constant 9.99999974E-6 : f32
    %61 = vector.broadcast %cst_40 : f32 to vector<32x128xf32>
    %62 = arith.addf %60, %61 : vector<32x128xf32>
    %63 = math.rsqrt %62 : vector<32x128xf32>
    %64 = arith.mulf %58, %63 : vector<32x128xf32>
    %c6 = arith.constant 6 : index
    %c0_41 = arith.constant 0 : index
    %65 = vector.load %arg6[%c6, %c0_41] : memref<8x128xf32, #tpu.memory_space<vmem>>, vector<1x128xf32>
    %66 = vector.broadcast %65 : vector<1x128xf32> to vector<32x128xf32>
    %67 = arith.mulf %64, %66 : vector<32x128xf32>
    %c7 = arith.constant 7 : index
    %c0_42 = arith.constant 0 : index
    %68 = vector.load %arg6[%c7, %c0_42] : memref<8x128xf32, #tpu.memory_space<vmem>>, vector<1x128xf32>
    %69 = vector.broadcast %68 : vector<1x128xf32> to vector<32x128xf32>
    %70 = arith.addf %67, %69 : vector<32x128xf32>
    %cst_43 = arith.constant 0.000000e+00 : f32
    %71 = vector.broadcast %cst_43 : f32 to vector<32x128xf32>
    %72 = arith.cmpf ogt, %70, %71 : vector<32x128xf32>
    %cst_44 = arith.constant 0.000000e+00 : f32
    %73 = vector.broadcast %cst_44 : f32 to vector<32x128xf32>
    %74 = arith.minimumf %70, %73 : vector<32x128xf32>
    %75 = math.exp %74 : vector<32x128xf32>
    %cst_45 = arith.constant 1.000000e+00 : f32
    %76 = vector.broadcast %cst_45 : f32 to vector<32x128xf32>
    %77 = arith.subf %75, %76 : vector<32x128xf32>
    %78 = arith.select %72, %70, %77 : vector<32x128xi1>, vector<32x128xf32>
    %c0_46 = arith.constant 0 : index
    %c0_47 = arith.constant 0 : index
    %c0_48 = arith.constant 0 : index
    %79 = vector.load %arg9[%c0_46, %c0_47, %c0_48] : memref<2x128x8xf32, #tpu.memory_space<vmem>>, vector<1x128x8xf32>
    %80 = vector.shape_cast %79 : vector<1x128x8xf32> to vector<128x8xf32>
    %cst_49 = arith.constant dense<0.000000e+00> : vector<32x8xf32>
    %81 = tpu.matmul %50, %80, %cst_49 {dimension_numbers = #tpu.dot_dimension_numbers<[1], [0], [0], [1], [0, 0, 1, 1], [], []>} : vector<32x128xf32>, vector<128x8xf32>, vector<32x8xf32> -> vector<32x8xf32>
    %c1_50 = arith.constant 1 : index
    %c0_51 = arith.constant 0 : index
    %c0_52 = arith.constant 0 : index
    %82 = vector.load %arg9[%c1_50, %c0_51, %c0_52] : memref<2x128x8xf32, #tpu.memory_space<vmem>>, vector<1x128x8xf32>
    %83 = vector.shape_cast %82 : vector<1x128x8xf32> to vector<128x8xf32>
    %cst_53 = arith.constant dense<0.000000e+00> : vector<32x8xf32>
    %84 = tpu.matmul %78, %83, %cst_53 {dimension_numbers = #tpu.dot_dimension_numbers<[1], [0], [0], [1], [0, 0, 1, 1], [], []>} : vector<32x128xf32>, vector<128x8xf32>, vector<32x8xf32> -> vector<32x8xf32>
    %85 = arith.addf %81, %84 : vector<32x8xf32>
    %c0_54 = arith.constant 0 : index
    %c0_55 = arith.constant 0 : index
    %86 = vector.load %arg10[%c0_54, %c0_55] : memref<1x8xf32, #tpu.memory_space<vmem>>, vector<1x8xf32>
    %87 = vector.broadcast %86 : vector<1x8xf32> to vector<32x8xf32>
    %88 = arith.addf %85, %87 : vector<32x8xf32>
    %c0_56 = arith.constant 0 : index
    %c0_57 = arith.constant 0 : index
    %89 = vector.load %arg11[%c0_56, %c0_57] : memref<32x8xf32, #tpu.memory_space<vmem>>, vector<32x8xf32>
    tpu.vector_store %arg11[%c0_56, %c0_57], %88 {strides = array<i32>} : memref<32x8xf32, #tpu.memory_space<vmem>>, vector<32x8xf32>,
    return
  }
  func.func @transform_0(%arg0: i32) -> (i32, i32) {
    %c0_i32 = arith.constant 0 : i32
    %c0_i32_0 = arith.constant 0 : i32
    return %arg0, %c0_i32 : i32, i32
  }
  func.func @transform_1(%arg0: i32) -> (i32, i32) {
    %c0_i32 = arith.constant 0 : i32
    %c0_i32_0 = arith.constant 0 : i32
    %c0_i32_1 = arith.constant 0 : i32
    return %c0_i32, %c0_i32_0 : i32, i32
  }
  func.func @transform_2(%arg0: i32) -> (i32, i32) {
    %c0_i32 = arith.constant 0 : i32
    %c0_i32_0 = arith.constant 0 : i32
    %c0_i32_1 = arith.constant 0 : i32
    return %c0_i32, %c0_i32_0 : i32, i32
  }
  func.func @transform_3(%arg0: i32) -> (i32, i32) {
    %c0_i32 = arith.constant 0 : i32
    %c0_i32_0 = arith.constant 0 : i32
    %c0_i32_1 = arith.constant 0 : i32
    return %c0_i32, %c0_i32_0 : i32, i32
  }
  func.func @transform_4(%arg0: i32) -> (i32, i32) {
    %c0_i32 = arith.constant 0 : i32
    %c0_i32_0 = arith.constant 0 : i32
    %c0_i32_1 = arith.constant 0 : i32
    return %c0_i32, %c0_i32_0 : i32, i32
  }
  func.func @transform_5(%arg0: i32) -> (i32, i32) {
    %c0_i32 = arith.constant 0 : i32
    %c0_i32_0 = arith.constant 0 : i32
    %c0_i32_1 = arith.constant 0 : i32
    return %c0_i32, %c0_i32_0 : i32, i32
  }
  func.func @transform_6(%arg0: i32) -> (i32, i32, i32) {
    %c0_i32 = arith.constant 0 : i32
    %c0_i32_0 = arith.constant 0 : i32
    %c0_i32_1 = arith.constant 0 : i32
    %c0_i32_2 = arith.constant 0 : i32
    return %c0_i32, %c0_i32_0, %c0_i32_1 : i32, i32, i32
  }
  func.func @transform_7(%arg0: i32) -> (i32, i32) {
    %c0_i32 = arith.constant 0 : i32
    %c0_i32_0 = arith.constant 0 : i32
    %c0_i32_1 = arith.constant 0 : i32
    return %c0_i32, %c0_i32_0 : i32, i32
  }
  func.func @transform_8(%arg0: i32) -> (i32, i32, i32) {
    %c0_i32 = arith.constant 0 : i32
    %c0_i32_0 = arith.constant 0 : i32
    %c0_i32_1 = arith.constant 0 : i32
    %c0_i32_2 = arith.constant 0 : i32
    return %c0_i32, %c0_i32_0, %c0_i32_1 : i32, i32, i32
  }
  func.func @transform_9(%arg0: i32) -> (i32, i32) {
    %c0_i32 = arith.constant 0 : i32
    %c0_i32_0 = arith.constant 0 : i32
    %c0_i32_1 = arith.constant 0 : i32
    return %c0_i32, %c0_i32_0 : i32, i32
  }
  func.func @transform_10(%arg0: i32) -> (i32, i32) {
    %c0_i32 = arith.constant 0 : i32
    %c0_i32_0 = arith.constant 0 : i32
    return %arg0, %c0_i32 : i32, i32
  }
}

</mosaic_0001>

<bundles_post_ra>
// kernel: tpu_custom_call.1
= control target key start
LH: loop header
LB: loop body
LE: loop exit
PB: predicated region body
PF: predicated region fallthrough
CT: control target
= control target key end

     0   :  { %15 = vsyncpa [#allocation3], 0  ;;  %s3387_s13 = smov 0   ;;  %s4162_s0 = inlined_call_operand.vmem [shape: f32[64,12], index: 0, kind: input, shape index: {}]   ;;  %s4163_s1 = inlined_call_operand.vmem [shape: f32[12,64], index: 1, kind: input, shape index: {}]   ;;  %s4164_s2 = inlined_call_operand.vmem [shape: f32[1,64], index: 2, kind: input, shape index: {}]   ;;  %s4165_s3 = inlined_call_operand.vmem [shape: f32[12,128], index: 3, kind: input, shape index: {}]   ;;  %s4166_s4 = inlined_call_operand.vmem [shape: f32[64,128], index: 4, kind: input, shape index: {}]   ;;  %s4167_s5 = inlined_call_operand.vmem [shape: f32[8,128], index: 5, kind: input, shape index: {}]   ;;  %s4168_s6 = inlined_call_operand.hbm [shape: f32[3,128,128], index: 6, kind: input, shape index: {}]   ;;  %s4169_s7 = inlined_call_operand.vmem [shape: f32[128,128], index: 7, kind: input, shape index: {}]   ;;  %s4170_s8 = inlined_call_operand.vmem [shape: f32[2,128,8], index: 8, kind: input, shape index: {}]   ;;  %s4171_s9 = inlined_call_operand.vmem [shape: f32[1,8], index: 9, kind: input, shape index: {}]   ;;  %s4172_s10 = inlined_call_operand.vmem [shape: f32[64,8], index: 10, kind: output, shape index: {}]  }
   0x1 LB: > { %s2201_s14 = sadd.s32 4294967295, %s3320_s13   ;;  %p2203_p0 = scmp.ge.s32.totalorder %s3320_s13, 1  ;;  %s3320_s13 = sphi %s3387_s13, %s21_s13  }
   0x2   : > { %p267_p1 = scmp.lt.s32.totalorder %s3320_s13, 3  ;;  %s3322_s15 = smov [#allocation2]  }
   0x3   : > { %s294_s16 = sshll.u32 %s3322_s15, 4  ;;  %p3401_p3 = scmp.eq.s32.totalorder %s2201_s14, 0  ;;  %s295_s16 = int_to_ptr.vmem [resolvable:$true] %s294_s16 }
   0x4   : > { %p3395_p2 = pnand %p2203_p0, %p267_p1  ;;  %s3282_s22 = scalar_lea.hbm %s4168_s6, 6144 }
   0x5   : > { %s4177_s18 = scalar_select %p3401_p3, 1, 0 }
   0x6   : > { %s4176_s17 = scalar_select %p3395_p2, 1, 0 }
   0x7   : > { %p3210_p4 = pneg %p3395_p2  ;;  %p3283_p6 = scmp.ne.s32.totalorder %s4168_s6, %s3282_s22 }
   0x8   : > { %p3289_p10 = scmp.lt.u32.totalorder %s3282_s22, %s4168_s6 }
   0x9   : > { %p3409_p5 = pnand %p3401_p3, %p3210_p4 }
   0xb   : > { %p3284_p7 = pneg %p3409_p5 }
   0xd   : > { %p3285_p8 = pnand %p3284_p7, %p3283_p6 }
   0xf   : > { %p3286_p9 = pneg %p3285_p8 }
  0x11   : > { %p3291_p11 = pnand %p3289_p10, %p3286_p9 }
  0x13   : > { %3294 = shalt.err (!%p3291_p11)
}
  0x14   : > { %s3295_s27 = scalar_lea.vmem %s295_s16, 6144  ;;  %p3303_p1 = scmp.lt.s32.totalorder %s295_s16, %s295_s16 }
  0x15   : > { %p3296_p12 = scmp.ne.s32.totalorder %s295_s16, %s3295_s27  ;;  %p3304_p4 = scmp.lt.s32.totalorder %s3295_s27, %s3295_s27 }
  0x17   : > { %p3298_p13 = pnand %p3296_p12, %p3284_p7  ;;  %p3305_p3 = por %p3304_p4, %p3303_p1 }
  0x19   : > { %p3299_p0 = pneg %p3298_p13 }
  0x1b   : > { %p3306_p2 = pnand %p3305_p3, %p3299_p0 }
  0x1d   : > { %3309 = shalt.err (!%p3306_p2)
}
  0x1e   : > { %s3323_s28 = smov 128   ;;  %s3324_s29 = smov 8  }
  0x1f   : > { %3213 = dma.hbm_to_vmem [thread:$0]  (!%p3409_p5), %s4168_s6, 6144, %s295_s16, [#allocation3], %s3323_s28, %s3323_s28, %s3324_s29  }
  0x20   : > { %p4179_p6 = scmp.ne.s32.totalorder %s4176_s17, 0 }
  0x21   : > { %p4180_p8 = scmp.ne.s32.totalorder (!%p4179_p6), %s4177_s18, 0 }
  0x22   : > { %328 = sbr.rel (%p4179_p6) target bundleno = 2454 (0x996), region = 60 }
  0x29   : > { %3315 = dma.done.wait (%p4180_p8), [#allocation3], 6144  }
  0x2a   : > { %3317 = vsyncadd (%p4180_p8), [#allocation3], 4294961152  ;;  %s2208_s12 = sshll.u32 %s2201_s14, 2  ;;  %vm404_vm0 = vcmask 1043456   ;;  %vm391_vm1 = vcmask 97280   ;;  %vm3325_vm2 = vmmov 1  }
  0x2b   : > { %p367_p2 = scmp.lt.s32.totalorder %s2208_s12, 7  ;;  %vm3440_vm3 = vmpackc.low %vm404_vm0, %vm3325_vm2  ;;  %v382_v1 = vld [vmem:[%s4163_s1] sm:$0xff]  ;;  %v383_v2 = vld [vmem:[%s4163_s1 + $0x8] sm:$0xf] }
  0x2c   : > { %v2866_v4 = vpack.c.bf16 %v383_v2, %v382_v1  ;;  %v911_v8 = vld [vmem:[%s4166_s4] sm:$0xff]  ;;  %v912_v9 = vld [vmem:[%s4166_s4 + $0x8] sm:$0xff]  ;;  %v913_v11 = vld [vmem:[%s4166_s4 + $0x10] sm:$0xff]  ;;  %v3326_v1 = vmov 683565275  }
  0x2d   : > { %s4190_s12 = smov (!%p367_p2, %s2208_s12), 7  ;;  %v2872_v10 = vpack.c.bf16 %v912_v9, %v911_v8  ;;  %v914_v12 = vld [vmem:[%s4166_s4 + $0x18] sm:$0xff]  ;;  %v915_v13 = vld [vmem:[%s4166_s4 + $0x20] sm:$0xff]  ;;  %v916_v15 = vld [vmem:[%s4166_s4 + $0x28] sm:$0xff] }
  0x2e   : > { %s2209_s15 = sshll.u32 %s4190_s12, 3  ;;  %2868 = vmatprep.subr.msk.bf16.mxu0 %vm3440_vm3, %v2866_v4  ;;  %v2876_v14 = vpack.c.bf16 %v914_v12, %v913_v11  ;;  %v2880_v16 = vpack.c.bf16 %v916_v15, %v915_v13  ;;  %v917_v17 = vld [vmem:[%s4166_s4 + $0x30] sm:$0xff]  ;;  %v918_v18 = vld [vmem:[%s4166_s4 + $0x38] sm:$0xff]  ;;  %v2212_v20 = vld [vmem:[%s4164_s2] ss:$0 sm:$0xff] }
  0x2f   : > { %s370_s18 = scalar_lea.vmem %s4162_s0, %s2209_s15  ;;  %2871 = vmatpush3.bf16.msk.msra.mxu0 %vm3440_vm3, %v2866_v4  ;;  %v2884_v19 = vpack.c.bf16 %v918_v18, %v917_v17  ;;  %v909_v21 = vld [vmem:[%s4165_s3] sm:$0xff]  ;;  %v910_v22 = vld [vmem:[%s4165_s3 + $0x8] sm:$0xf]  ;;  %v3327_v4 = vmov 2475754826   ;;  %s376_s24 = scalar_lea.vmem %s4172_s10, %s2209_s15 }
  0x30   : > { %v3455_v3 = vld [vmem:[%s370_s18] sm:$0xff]  ;;  %v3463_v5 = vld [vmem:[%s370_s18 + $0x8] sm:$0xff]  ;;  %v3465_v6 = vld [vmem:[%s370_s18 + $0x10] sm:$0xff]  ;;  %2873 = vmatprep.subr.bf16.mxu0 %v2872_v10  ;;  %v3510_v26 = vpack.c.bf16 %v910_v22, %v909_v21  ;;  %v3329_v12 = vmov 2102212464  }
  0x31   : > { %2486 = vmatprep.mubr.msk.f32.mxu0 %vm391_vm1, %v3455_v3  ;;  %v3471_v7 = vld [vmem:[%s370_s18 + $0x18] sm:$0xff]  ;;  %v3331_v21 = vmov 1326507024  }
  0x32   : > { %2487 = vmatmul.mubr.msk.f32.vlgmr.msra.gmra.mrb[0].mxu0 %vm391_vm1, %v3463_v5 }
  0x33   : > { %2489 = vmatprep.mubr.msk.f32.mxu0 %vm391_vm1, %v3465_v6  ;;  %2875 = vmatpush3.bf16.msra.mxu0 %v2872_v10  ;;  %v3328_v10 = vmov 2131351028  }
  0x34   : > { %2877 = vmatprep.subr.bf16.mxu0 %v2876_v14 }
  0x36   : > { %2490 = vmatmul.mubr.msk.f32.gmra.mrb[2].mxu0 %vm391_vm1, %v3471_v7 }
  0x37   : > { %2879 = vmatpush3.bf16.msra.mxu0 %v2876_v14  ;;  %v3330_v14 = vmov 920167782  }
  0x38   : > { %2881 = vmatprep.subr.bf16.mxu0 %v2880_v16 }
  0x3b   : > { %2883 = vmatpush3.bf16.msra.mxu0 %v2880_v16 }
  0x3c   : > { %2885 = vmatprep.subr.bf16.mxu0 %v2884_v19 }
  0x3f   : > { %2887 = vmatpush3.bf16.msra.mxu0 %v2884_v19 }
  0x40   : > { %2890 = vmatprep.subr.msk.bf16.mxu0 %vm3440_vm3, %v3510_v26 }
 0x105   : > { %v2488_v23 = vpop.f32.mrb[0].mxu0 }
 0x106   : > { %v3508_v24 = vadd.f32 %v2488_v23, %v2212_v20  ;;  %v474_v25 = vpop.f32.mrb[1].mxu0 }
 0x107   : > { %v3512_v27 = vadd.f32 %v2212_v20, %v474_v25 }
 0x108   : > { %v597_v28 = vand.u32 2147483647, %v3508_v24  ;;  %v600_v29 = vand.u32 2139095040, %v3508_v24  ;;  %vm599_vm0 = vcmp.lt.s32.totalorder %v3508_v24, 0 }
 0x109   : > { %v493_v30 = vand.u32 2147483647, %v3512_v27  ;;  %v496_v31 = vand.u32 2139095040, %v3512_v27  ;;  %v2491_v32 = vpop.f32.mrb[2].mxu0 }
 0x10a   : > { %v601_v33 = vshrl.u32 %v600_v29, 23  ;;  %v604_v34 = vand.u32 8388607, %v597_v28  ;;  %v3520_v35 = vadd.f32 %v2491_v32, %v2212_v20  ;;  %v484_v36 = vpop.f32.mrb[3].mxu0  ;;  %vm3619_vm2 = vcmp.le.f32.partialorder %v597_v28, 0.7853982 }
 0x10b   : > { %v497_v37 = vshrl.u32 %v496_v31, 23  ;;  %v500_v38 = vand.u32 8388607, %v493_v30  ;;  %v3527_v39 = vadd.f32 %v2212_v20, %v484_v36 }
 0x10c   : > { %v2222_v40 = vadd.s32 4294967169, %v601_v33  ;;  %v605_v41 = vor.u32 8388608, %v604_v34  ;;  %v805_v42 = vand.u32 2147483647, %v3520_v35  ;;  %v808_v45 = vand.u32 2139095040, %v3520_v35 }
 0x10d   : > { %v2218_v43 = vadd.s32 4294967169, %v497_v37  ;;  %v501_v44 = vor.u32 8388608, %v500_v38  ;;  %v701_v50 = vand.u32 2147483647, %v3527_v39  ;;  %v704_v61 = vand.u32 2139095040, %v3527_v39 }
 0x10e   : > { %v607_v46 = vadd.s32 1, %v2222_v40  ;;  %v3533_v47 = vand.u32 8388607, %v805_v42  ;;  %v809_v49 = vshrl.u32 %v808_v45, 23  ;;  %v3536_v51 = vshll.u32 %v605_v41, 8 }
 0x10f   : > { %v503_v48 = vadd.s32 1, %v2218_v43  ;;  %v3538_v53 = vshll.u32 %v501_v44, 8  ;;  %v3546_v62 = vand.u32 8388607, %v701_v50 }
 0x110   : > { %vm608_vm4 = vcmp.gt.s32.totalorder %v607_v46, 0  ;;  %v2230_v54 = vadd.s32 4294967169, %v809_v49  ;;  %v813_v58 = vor.u32 8388608, %v3533_v47 }
 0x111   : > { %v609_v52 = vsel %vm608_vm4, %v607_v46, 0  ;;  %vm504_vm5 = vcmp.gt.s32.totalorder %v503_v48, 0 }
 0x112   : > { %v610_v55 = vshrl.u32 %v609_v52, 5  ;;  %v611_v56 = vand.u32 31, %v609_v52  ;;  %v505_v57 = vsel %vm504_vm5, %v503_v48, 0  ;;  %v3550_v9 = vadd.s32 1, %v2230_v54 }
 0x113   : > { %v3541_v59 = vshrl.u32 %v505_v57, 5  ;;  %v507_v60 = vand.u32 31, %v505_v57 }
 0x114   : > { %v612_v63 = vsub.s32 32, %v611_v56  ;;  %v614_v2 = vshll.u32 %v3326_v1, %v611_v56  ;;  %v617_v8 = vshll.u32 %v3327_v4, %v611_v56  ;;  %v620_v11 = vshll.u32 %v3328_v10, %v611_v56 }
 0x115   : > { %v623_v13 = vshll.u32 %v3329_v12, %v611_v56  ;;  %v626_v15 = vshll.u32 %v3330_v14, %v611_v56  ;;  %vm629_vm6 = vcmp.lt.s32.totalorder %v610_v55, 1  ;;  %vm630_vm7 = vcmp.lt.s32.totalorder %v610_v55, 2 }
 0x116   : > { %v615_v16 = vshrl.u32 %v3327_v4, %v612_v63  ;;  %v618_v17 = vshrl.u32 %v3328_v10, %v612_v63  ;;  %v621_v18 = vshrl.u32 %v3329_v12, %v612_v63  ;;  %v613_v19 = vshrl.u32 %v3326_v1, %v612_v63 }
 0x117   : > { %v624_v20 = vshrl.u32 %v3330_v14, %v612_v63  ;;  %v627_v22 = vshrl.u32 %v3331_v21, %v612_v63  ;;  %vm631_vm8 = vcmp.lt.s32.totalorder %v610_v55, 3  ;;  %v508_v31 = vsub.s32 32, %v507_v60 }
 0x118   : > { %v616_v23 = vor.u32 %v615_v16, %v614_v2  ;;  %v619_v25 = vor.u32 %v618_v17, %v617_v8  ;;  %v622_v29 = vor.u32 %v621_v18, %v620_v11  ;;  %vm632_vm9 = vcmp.lt.s32.totalorder %v610_v55, 4 }
 0x119   : > { %v625_v32 = vor.u32 %v624_v20, %v623_v13  ;;  %v628_v33 = vor.u32 %v627_v22, %v626_v15  ;;  %v510_v34 = vshll.u32 %v3326_v1, %v507_v60  ;;  %v513_v45 = vshll.u32 %v3327_v4, %v507_v60 }
 0x11a   : > { %v633_v36 = vsel %vm629_vm6, %v613_v19, %v616_v23  ;;  %v634_v37 = vsel %vm632_vm9, %v622_v29, 2102212464  ;;  %v637_v38 = vsel %vm629_vm6, %v616_v23, %v619_v25  ;;  %v641_v40 = vsel %vm629_vm6, %v619_v25, %v622_v29 }
 0x11b   : > { %v635_v41 = vsel %vm631_vm8, %v619_v25, %v634_v37  ;;  %v638_v43 = vsel %vm632_vm9, %v625_v32, 920167782  ;;  %v642_v44 = vsel %vm632_vm9, %v628_v33, 1326507024  ;;  %v509_v49 = vshrl.u32 %v3326_v1, %v508_v31 }
 0x11c   : > { %v639_v46 = vsel %vm631_vm8, %v622_v29, %v638_v43  ;;  %v643_v48 = vsel %vm631_vm8, %v625_v32, %v642_v44  ;;  %v511_v52 = vshrl.u32 %v3327_v4, %v508_v31  ;;  %v636_v54 = vsel %vm630_vm7, %v633_v36, %v635_v41 }
 0x11d   : > { %v640_v56 = vsel %vm630_vm7, %v637_v38, %v639_v46  ;;  %v644_v57 = vsel %vm630_vm7, %v641_v40, %v643_v48  ;;  %v514_v63 = vshrl.u32 %v3328_v10, %v508_v31  ;;  %v516_v17 = vshll.u32 %v3328_v10, %v507_v60 }
 0x11e   : > { %v3576_v2 = vmul.u32.u64.low %v3536_v51, %v644_v57  ;;  %v3577_v8 = vmul.u32.u64.high %v3536_v51, %v644_v57, %v3576_v2  ;;  %v3580_v11 = vmul.u32.u64.low %v3536_v51, %v640_v56  ;;  %v3581_v13 = vmul.u32.u64.high %v3536_v51, %v640_v56, %v3580_v11 }
 0x11f   : > { %v512_v15 = vor.u32 %v511_v52, %v510_v34  ;;  %v515_v16 = vor.u32 %v514_v63, %v513_v45  ;;  %v517_v18 = vshrl.u32 %v3329_v12, %v508_v31  ;;  %v652_v19 = vmul.u32 %v3536_v51, %v636_v54 }
 0x120   : > { %v519_v55 = vshll.u32 %v3329_v12, %v507_v60  ;;  %v520_v20 = vshrl.u32 %v3330_v14, %v508_v31  ;;  %v523_v22 = vshrl.u32 %v3331_v21, %v508_v31  ;;  %v522_v25 = vshll.u32 %v3330_v14, %v507_v60 }
 0x121   : > { %v518_v23 = vor.u32 %v517_v18, %v516_v17  ;;  %vm525_vm10 = vcmp.lt.s32.totalorder %v3541_v59, 1  ;;  %vm526_vm11 = vcmp.lt.s32.totalorder %v3541_v59, 2  ;;  %vm654_vm12 = vc.u32 %v3577_v8, %v3580_v11 }
 0x122   : > { %v655_v29 = vadd.s32 1, %v3581_v13  ;;  %v521_v32 = vor.u32 %v520_v20, %v519_v55  ;;  %vm527_vm13 = vcmp.lt.s32.totalorder %v3541_v59, 3  ;;  %v524_v51 = vor.u32 %v523_v22, %v522_v25 }
 0x123   : > { %vm528_vm14 = vcmp.lt.s32.totalorder %v3541_v59, 4  ;;  %v529_v33 = vsel %vm525_vm10, %v509_v49, %v512_v15  ;;  %v533_v34 = vsel %vm525_vm10, %v512_v15, %v515_v16  ;;  %v537_v37 = vsel %vm525_vm10, %v515_v16, %v518_v23 }
 0x124   : > { %v656_v31 = vsel %vm654_vm12, %v655_v29, %v3581_v13  ;;  %v530_v36 = vsel %vm528_vm14, %v518_v23, 2102212464  ;;  %v534_v60 = vsel %vm528_vm14, %v521_v32, 920167782  ;;  %v538_v43 = vsel %vm528_vm14, %v524_v51, 1326507024 }
 0x125   : > { %v657_v38 = vadd.s32 %v656_v31, %v652_v19  ;;  %v531_v40 = vsel %vm527_vm13, %v515_v16, %v530_v36  ;;  %v535_v41 = vsel %vm527_vm13, %v518_v23, %v534_v60  ;;  %v539_v46 = vsel %vm527_vm13, %v521_v32, %v538_v43 }
 0x126   : > { %v532_v44 = vsel %vm526_vm11, %v529_v33, %v531_v40  ;;  %v536_v45 = vsel %vm526_vm11, %v533_v34, %v535_v41  ;;  %vm816_vm15 = vcmp.gt.s32.totalorder %v3550_v9, 0  ;;  %v540_v49 = vsel %vm526_vm11, %v537_v37, %v539_v46 }
 0x127   : > { %v658_v48 = vadd.s32 536870912, %v657_v38  ;;  %v3605_v52 = vmul.u32.u64.low %v3538_v53, %v536_v45  ;;  %v3606_v54 = vmul.u32.u64.high %v3538_v53, %v536_v45, %v3605_v52  ;;  %v817_v63 = vsel %vm816_vm15, %v3550_v9, 0 }
 0x128   : > { %v3610_v56 = vmul.u32.u64.low %v3538_v53, %v540_v49  ;;  %v3611_v57 = vmul.u32.u64.high %v3538_v53, %v540_v49, %v3610_v56  ;;  %v705_v2 = vshrl.u32 %v704_v61, 23  ;;  %v819_v15 = vand.u32 31, %v817_v63 }
 0x129   : > { %v659_v13 = vshrl.u32 %v658_v48, 30  ;;  %v3624_v16 = vadd.s32 %v3580_v11, %v3577_v8  ;;  %v548_v17 = vmul.u32 %v3538_v53, %v532_v44  ;;  %v3629_v9 = vshll.u32 %v813_v58, 8 }
 0x12a   : > { %v551_v19 = vadd.s32 1, %v3606_v54  ;;  %v820_v55 = vsub.s32 32, %v819_v15  ;;  %vm550_vm4 = vc.u32 %v3611_v57, %v3605_v52  ;;  %v818_v28 = vshrl.u32 %v817_v63, 5 }
 0x12b   : > { %v660_v61 = vshll.u32 %v659_v13, 30  ;;  %v683_v18 = vsub.s32 4, %v659_v13  ;;  %v2226_v20 = vadd.s32 4294967169, %v705_v2  ;;  %v709_v22 = vor.u32 8388608, %v3546_v62 }
 0x12c   : > { %v552_v47 = vsel %vm550_vm4, %v551_v19, %v3606_v54  ;;  %v822_v58 = vshll.u32 %v3326_v1, %v819_v15  ;;  %v823_v23 = vshrl.u32 %v3327_v4, %v820_v55  ;;  %v825_v25 = vshll.u32 %v3327_v4, %v819_v15 }
 0x12d   : > { %v661_v8 = vsub.s32 %v657_v38, %v660_v61  ;;  %v3637_v53 = vsel %vm599_vm0, %v683_v18, %v659_v13  ;;  %v553_v11 = vadd.s32 %v552_v47, %v548_v17  ;;  %v826_v29 = vshrl.u32 %v3328_v10, %v820_v55 }
 0x12e   : > { %v821_v51 = vshrl.u32 %v3326_v1, %v820_v55  ;;  %v828_v33 = vshll.u32 %v3328_v10, %v819_v15  ;;  %v829_v34 = vshrl.u32 %v3329_v12, %v820_v55  ;;  %v686_v31 = vsel %vm3619_vm2, 0, %v3637_v53 }
 0x12f   : > { %v663_v32 = vsub.s32 0, %v661_v8  ;;  %v554_v36 = vadd.s32 536870912, %v553_v11  ;;  %v824_v60 = vor.u32 %v823_v23, %v822_v58  ;;  %v827_v37 = vor.u32 %v826_v29, %v825_v25 }
 0x130   : > { %v830_v40 = vor.u32 %v829_v34, %v828_v33  ;;  %v831_v41 = vshll.u32 %v3329_v12, %v819_v15  ;;  %v832_v43 = vshrl.u32 %v3330_v14, %v820_v55  ;;  %v834_v45 = vshll.u32 %v3330_v14, %v819_v15 }
 0x131   : > { %v2223_v38 = vmin.u32 %v663_v32, %v661_v8  ;;  %v3652_v44 = vshrl.u32 %v554_v36, 30  ;;  %v835_v46 = vshrl.u32 %v3331_v21, %v820_v55  ;;  %vm837_vm5 = vcmp.lt.s32.totalorder %v818_v28, 1 }
 0x132   : > { %v833_v49 = vor.u32 %v832_v43, %v831_v41  ;;  %vm839_vm6 = vcmp.lt.s32.totalorder %v818_v28, 3  ;;  %vm840_vm7 = vcmp.lt.s32.totalorder %v818_v28, 4  ;;  %v841_v63 = vsel %vm837_vm5, %v821_v51, %v824_v60 }
 0x133   : > { %v665_v48 = vclz %v2223_v38  ;;  %v556_v54 = vshll.u32 %v3652_v44, 30  ;;  %v836_v56 = vor.u32 %v835_v46, %v834_v45  ;;  %v842_v2 = vsel %vm840_vm7, %v830_v40, 2102212464 }
 0x134   : > { %v843_v17 = vsel %vm839_vm6, %v827_v37, %v842_v2  ;;  %v845_v61 = vsel %vm837_vm5, %v824_v60, %v827_v37  ;;  %v846_v15 = vsel %vm840_vm7, %v833_v49, 920167782  ;;  %vm838_vm8 = vcmp.lt.s32.totalorder %v818_v28, 2 }
 0x135   : > { %v2224_v13 = vadd.s32 4294967294, %v665_v48  ;;  %v3662_v18 = vsub.s32 %v553_v11, %v556_v54  ;;  %v847_v19 = vsel %vm839_vm6, %v830_v40, %v846_v15  ;;  %v849_v55 = vsel %vm837_vm5, %v827_v37, %v830_v40 }
 0x136   : > { %v844_v53 = vsel %vm838_vm8, %v841_v63, %v843_v17  ;;  %v848_v47 = vsel %vm838_vm8, %v845_v61, %v847_v19  ;;  %v850_v58 = vsel %vm840_vm7, %v836_v56, 1326507024  ;;  %v711_v32 = vadd.s32 1, %v2226_v20 }
 0x137   : > { %vm2225_vm9 = vcmp.lt.s32.totalorder %v2224_v13, 0  ;;  %v559_v25 = vsub.s32 0, %v3662_v18  ;;  %v851_v29 = vsel %vm839_vm6, %v833_v49, %v850_v58  ;;  %v549_v46 = vadd.s32 %v3605_v52, %v3611_v57 }
 0x138   : > { %v668_v23 = vsel %vm2225_vm9, 0, %v2224_v13  ;;  %v852_v34 = vsel %vm838_vm8, %v849_v55, %v851_v29  ;;  %vm712_vm10 = vcmp.gt.s32.totalorder %v711_v32, 0  ;;  %v3682_v49 = vadd.s32 3, %v686_v31 }
 0x139   : > { %v669_v51 = vsub.s32 32, %v668_v23  ;;  %v670_v33 = vshll.u32 %v661_v8, %v668_v23  ;;  %v673_v11 = vsub.s32 4294967266, %v668_v23  ;;  %v2219_v36 = vmin.u32 %v559_v25, %v3662_v18 }
 0x13a   : > { %v3671_v60 = vmul.u32.u64.low %v3629_v9, %v852_v34  ;;  %v3672_v37 = vmul.u32.u64.high %v3629_v9, %v852_v34, %v3671_v60  ;;  %v3676_v41 = vmul.u32.u64.low %v3629_v9, %v848_v47  ;;  %v3677_v43 = vmul.u32.u64.high %v3629_v9, %v848_v47, %v3676_v41 }
 0x13b   : > { %v671_v38 = vshrl.u32 %v3624_v16, %v669_v51  ;;  %v674_v40 = vadd.s32 127, %v673_v11  ;;  %v561_v28 = vclz %v2219_v36  ;;  %v713_v20 = vsel %vm712_vm10, %v711_v32, 0 }
 0x13c   : > { %v715_v48 = vand.u32 31, %v713_v20  ;;  %v860_v56 = vmul.u32 %v3629_v9, %v844_v53  ;;  %vm862_vm11 = vc.u32 %v3672_v37, %v3676_v41  ;;  %v863_v63 = vadd.s32 1, %v3677_v43 }
 0x13d   : > { %v672_v8 = vor.u32 %v671_v38, %v670_v33  ;;  %v675_v45 = vshll.u32 %v674_v40, 23  ;;  %v2220_v54 = vadd.s32 4294967294, %v561_v28  ;;  %v3690_v13 = vshll.u32 %v709_v22, 8 }
 0x13e   : > { %v716_v2 = vsub.s32 32, %v715_v48  ;;  %v3692_v52 = vshrl.u32 %v713_v20, 5  ;;  %v579_v57 = vsub.s32 4, %v3652_v44  ;;  %v864_v9 = vsel %vm862_vm11, %v863_v63, %v3677_v43 }
 0x13f   : > { %v676_v16 = vor.u32 4788187, %v675_v45  ;;  %v679_v17 = vcvt.s32.f32 %v672_v8  ;;  %vm2221_vm12 = vcmp.lt.s32.totalorder %v2220_v54, 0  ;;  %v718_v15 = vshll.u32 %v3326_v1, %v715_v48 }
 0x140   : > { %v564_v61 = vsel %vm2221_vm12, 0, %v2220_v54  ;;  %v865_v53 = vadd.s32 %v864_v9, %v860_v56  ;;  %v721_v47 = vshll.u32 %v3327_v4, %v715_v48  ;;  %v719_v58 = vshrl.u32 %v3327_v4, %v716_v2 }
 0x141   : > { %v677_v31 = vand.u32 2147483647, %v676_v16  ;;  %v565_v19 = vsub.s32 32, %v564_v61  ;;  %v569_v55 = vsub.s32 4294967266, %v564_v61  ;;  %v566_v22 = vshll.u32 %v3662_v18, %v564_v61 }
 0x142   : > { %v722_v23 = vshrl.u32 %v3328_v10, %v716_v2  ;;  %v866_v32 = vadd.s32 536870912, %v865_v53  ;;  %v725_v51 = vshrl.u32 %v3329_v12, %v716_v2  ;;  %v720_v11 = vor.u32 %v719_v58, %v718_v15 }
 0x143   : > { %v680_v62 = vmul.f32 %v679_v17, %v677_v31  ;;  %v567_v25 = vshrl.u32 %v549_v46, %v565_v19  ;;  %v570_v29 = vadd.s32 127, %v569_v55  ;;  %v724_v34 = vshll.u32 %v3328_v10, %v715_v48 }
 0x144   : > { %v727_v36 = vshll.u32 %v3329_v12, %v715_v48  ;;  %v3704_v40 = vshrl.u32 %v866_v32, 30  ;;  %v728_v18 = vshrl.u32 %v3330_v14, %v716_v2  ;;  %vm495_vm13 = vcmp.lt.s32.totalorder %v3512_v27, 0 }
 0x145   : > { %v681_v33 = vxor.u32 2147483648, %v680_v62  ;;  %v568_v60 = vor.u32 %v567_v25, %v566_v22  ;;  %v571_v38 = vshll.u32 %v570_v29, 23  ;;  %v723_v43 = vor.u32 %v722_v23, %v721_v47 }
 0x146   : > { %v730_v28 = vshll.u32 %v3330_v14, %v715_v48  ;;  %v731_v20 = vshrl.u32 %v3331_v21, %v716_v2  ;;  %vm3717_vm14 = vcmp.le.f32.partialorder %v493_v30, 0.7853982  ;;  %v868_v45 = vshll.u32 %v3704_v40, 30 }
 0x147   : > { %v682_v4 = vsel %vm599_vm0, %v681_v33, %v680_v62  ;;  %v572_v8 = vor.u32 4788187, %v571_v38  ;;  %v726_v46 = vor.u32 %v725_v51, %v724_v34  ;;  %v729_v54 = vor.u32 %v728_v18, %v727_v36 }
 0x148   : > { %v685_v10 = vsel %vm3619_vm2, %v3508_v24, %v682_v4  ;;  %v732_v56 = vor.u32 %v731_v20, %v730_v28  ;;  %vm733_vm15 = vcmp.lt.s32.totalorder %v3692_v52, 1  ;;  %v575_v21 = vcvt.s32.f32 %v568_v60 }
 0x149   : > { %3234 = vcosq.f32 %v685_v10  ;;  %v573_v14 = vand.u32 2147483647, %v572_v8  ;;  %v3723_v59 = vsub.s32 %v865_v53, %v868_v45  ;;  %v717_v48 = vshrl.u32 %v3326_v1, %v716_v2 }
 0x14a   : > { %3236 = vsinq.f32 %v685_v10  ;;  %vm735_vm0 = vcmp.lt.s32.totalorder %v3692_v52, 3  ;;  %vm736_vm2 = vcmp.lt.s32.totalorder %v3692_v52, 4  ;;  %v741_v30 = vsel %vm733_vm15, %v720_v11, %v723_v43 }
 0x14b   : > { %v576_v16 = vmul.f32 %v575_v21, %v573_v14  ;;  %v871_v63 = vsub.s32 0, %v3723_v59  ;;  %v738_v17 = vsel %vm736_vm2, %v726_v46, 2102212464  ;;  %v742_v31 = vsel %vm736_vm2, %v729_v54, 920167782 }
 0x14c   : > { %vm734_vm4 = vcmp.lt.s32.totalorder %v3692_v52, 2  ;;  %v743_v61 = vsel %vm735_vm0, %v726_v46, %v742_v31  ;;  %v745_v1 = vsel %vm733_vm15, %v723_v43, %v726_v46  ;;  %v746_v2 = vsel %vm736_vm2, %v732_v56, 1326507024 }
 0x14d   : > { %v577_v9 = vxor.u32 2147483648, %v576_v16  ;;  %v2231_v15 = vmin.u32 %v871_v63, %v3723_v59  ;;  %v737_v19 = vsel %vm733_vm15, %v717_v48, %v720_v11  ;;  %v744_v55 = vsel %vm734_vm4, %v741_v30, %v743_v61 }
 0x14e   : > { %v739_v53 = vsel %vm735_vm0, %v723_v43, %v738_v17  ;;  %v747_v47 = vsel %vm735_vm0, %v729_v54, %v746_v2  ;;  %v3746_v62 = vmul.u32.u64.low %v3690_v13, %v744_v55  ;;  %v3747_v22 = vmul.u32.u64.high %v3690_v13, %v744_v55, %v3746_v62 }
 0x14f   : > { %v578_v58 = vsel %vm495_vm13, %v577_v9, %v576_v16  ;;  %v873_v23 = vclz %v2231_v15  ;;  %v748_v25 = vsel %vm734_vm4, %v745_v1, %v747_v47  ;;  %v580_v29 = vsel %vm495_vm13, %v579_v57, %v3652_v44  ;;  %v1131_v15 = vld [vmem:[#allocation2 + $0x8] sm:$0xff] }
 0x150   : > { %v581_v32 = vsel %vm3717_vm14, %v3512_v27, %v578_v58  ;;  %v3763_v51 = vmul.u32.u64.low %v3690_v13, %v748_v25  ;;  %v3764_v33 = vmul.u32.u64.high %v3690_v13, %v748_v25, %v3763_v51  ;;  %v740_v34 = vsel %vm734_vm4, %v737_v19, %v739_v53 }
 0x151   : > { %3238 = vcosq.f32 %v581_v32  ;;  %v2232_v11 = vadd.s32 4294967294, %v873_v23  ;;  %v691_v36 = vand.u32 3, %v3682_v49  ;;  %v759_v38 = vadd.s32 1, %v3747_v22 }
 0x152   : > { %3240 = vsinq.f32 %v581_v32  ;;  %v582_v44 = vsel %vm3717_vm14, 0, %v580_v29  ;;  %v756_v4 = vmul.u32 %v3690_v13, %v740_v34  ;;  %vm758_vm6 = vc.u32 %v3764_v33, %v3746_v62 }
 0x153   : > { %v3235_v60 = vpop.eup %3234  ;;  %vm2233_vm5 = vcmp.lt.s32.totalorder %v2232_v11, 0  ;;  %v760_v28 = vsel %vm758_vm6, %v759_v38, %v3747_v22  ;;  %v586_v49 = vadd.s32 3, %v582_v44  ;;  %vm693_vm7 = vcmp.eq.s32.totalorder %v691_v36, 0 }
 0x154   : > { %v3237_v57 = vpop.eup %3236  ;;  %v876_v18 = vsel %vm2233_vm5, 0, %v2232_v11  ;;  %v761_v20 = vadd.s32 %v760_v28, %v756_v4  ;;  %v697_v8 = vxor.u32 2147483648, %v3235_v60  ;;  %vm696_vm8 = vcmp.eq.s32.totalorder %v691_v36, 2 }
 0x155   : > { %v694_v43 = vxor.u32 2147483648, %v3237_v57  ;;  %v881_v52 = vsub.s32 4294967266, %v876_v18  ;;  %v877_v45 = vsub.s32 32, %v876_v18  ;;  %vm689_vm9 = vweird.f32 %v3508_v24 }
 0x156   : > { %v762_v46 = vadd.s32 536870912, %v761_v20  ;;  %vm692_vm10 = vcmp.lt.s32.totalorder %v691_v36, 2  ;;  %v698_v13 = vsel %vm696_vm8, %v697_v8, %v3237_v57  ;;  %v861_v54 = vadd.s32 %v3676_v41, %v3672_v37  ;;  %v1130_v41 = vld [vmem:[#allocation2] sm:$0xff] }
 0x157   : > { %v695_v10 = vsel %vm693_vm7, %v3235_v60, %v694_v43  ;;  %v882_v12 = vadd.s32 127, %v881_v52  ;;  %v587_v14 = vand.u32 3, %v586_v49  ;;  %v878_v1 = vshll.u32 %v3723_v59, %v876_v18 }
 0x158   : > { %v699_v21 = vsel %vm692_vm10, %v695_v10, %v698_v13  ;;  %v3779_v48 = vshrl.u32 %v762_v46, 30  ;;  %v879_v63 = vshrl.u32 %v861_v54, %v877_v45  ;;  %vm919_vm14 = vcmask 523264  }
 0x159   : > { %v883_v56 = vshll.u32 %v882_v12, 23  ;;  %v700_v30 = vsel %vm689_vm9, nan, %v699_v21  ;;  %vm592_vm11 = vcmp.eq.s32.totalorder %v587_v14, 2  ;;  %vm589_vm12 = vcmp.eq.s32.totalorder %v587_v14, 0 }
 0x15a   : > { %v764_v31 = vshll.u32 %v3779_v48, 30  ;;  %v880_v19 = vor.u32 %v879_v63, %v878_v1  ;;  %vm588_vm13 = vcmp.lt.s32.totalorder %v587_v14, 2  ;;  %vm585_vm15 = vweird.f32 %v3512_v27 }
 0x15b   : > { %v3239_v16 = vpop.eup %3238  ;;  %v884_v24 = vor.u32 4788187, %v883_v56  ;;  %v3784_v23 = vpack.c.bf16 %v1131_v15, %v1130_v41  ;;  %v757_v34 = vadd.s32 %v3746_v62, %v3764_v33  ;;  %vm807_vm2 = vcmp.lt.s32.totalorder %v3520_v35, 0 }
 0x15c   : > { %v3241_v17 = vpop.eup %3240  ;;  %v593_v61 = vxor.u32 2147483648, %v3239_v16  ;;  %v765_v9 = vsub.s32 %v761_v20, %v764_v31  ;;  %v887_v25 = vcvt.s32.f32 %v880_v19  ;;  %v891_v28 = vsub.s32 4, %v3704_v40  ;;  %v1132_v19 = vld [vmem:[#allocation2 + $0x10] sm:$0xff] }
 0x15d   : > { %v590_v2 = vxor.u32 2147483648, %v3241_v17  ;;  %v885_v22 = vand.u32 2147483647, %v884_v24  ;;  %v787_v20 = vsub.s32 4, %v3779_v48  ;;  %vm703_vm4 = vcmp.lt.s32.totalorder %v3527_v39, 0 }
 0x15e   : > { %v594_v37 = vsel %vm592_vm11, %v593_v61, %v3241_v17  ;;  %v767_v53 = vsub.s32 0, %v765_v9  ;;  %vm702_vm5 = vcmp.le.f32.partialorder %v701_v50, 0.7853982 }
 0x15f   : > { %v591_v55 = vsel %vm589_vm12, %v3239_v16, %v590_v2  ;;  %v888_v32 = vmul.f32 %v887_v25, %v885_v22  ;;  %v788_v45 = vsel %vm703_vm4, %v787_v20, %v3779_v48  ;;  %vm793_vm12 = vweird.f32 %v3527_v39  ;;  %v1135_v22 = vld [vmem:[#allocation2 + $0x28] sm:$0xff]  ;;  %v1124_v20 = vld [vmem:[%s4169_s7 + $0x50] sm:$0xff] }
 0x160   : > { %v595_v47 = vsel %vm588_vm13, %v591_v55, %v594_v37  ;;  %v2227_v59 = vmin.u32 %v767_v53, %v765_v9  ;;  %v790_v13 = vsel %vm702_vm5, 0, %v788_v45  ;;  %vm897_vm13 = vweird.f32 %v3520_v35  ;;  %v1133_v55 = vld [vmem:[#allocation2 + $0x18] sm:$0xff]  ;;  %v1139_v25 = vld [vmem:[#allocation2 + $0x48] sm:$0xff] }
 0x161   : > { %v596_v58 = vsel %vm585_vm15, nan, %v595_v47  ;;  %v889_v51 = vxor.u32 2147483648, %v888_v32  ;;  %v2898_v53 = vpack.c.bf16 %v1133_v55, %v1132_v19  ;;  %v1134_v47 = vld [vmem:[#allocation2 + $0x20] sm:$0xff]  ;;  %v1127_v45 = vld [vmem:[%s4169_s7 + $0x68] sm:$0xff] }
 0x162   : > { %2508 = vmatprep.mubr.msk.f32.mxu0 %vm919_vm14, %v596_v58  ;;  %v769_v29 = vclz %v2227_v59  ;;  %v1137_v58 = vld [vmem:[#allocation2 + $0x38] sm:$0xff]  ;;  %v1138_v59 = vld [vmem:[#allocation2 + $0x40] sm:$0xff] }
 0x163   : > { %2509 = vmatmul.mubr.msk.f32.vlgmr.msra.gmra.mrb[4].mxu0 %vm919_vm14, %v700_v30  ;;  %v890_v0 = vsel %vm807_vm2, %v889_v51, %v888_v32  ;;  %v1141_v32 = vld [vmem:[#allocation2 + $0x58] sm:$0xff] }
 0x164   : > { %2893 = vmatpush3.bf16.msk.msra.mxu0 %vm3440_vm3, %v3510_v26  ;;  %v2228_v27 = vadd.s32 4294967294, %v769_v29  ;;  %vm3799_vm3 = vcmp.le.f32.partialorder %v805_v42, 0.7853982  ;;  %v892_v42 = vsel %vm807_vm2, %v891_v28, %v3704_v40  ;;  %v794_v40 = vadd.s32 3, %v790_v13  ;;  %v1140_v29 = vld [vmem:[#allocation2 + $0x50] sm:$0xff]  ;;  %v1123_v28 = vld [vmem:[%s4169_s7 + $0x48] sm:$0xff] }
 0x165   : > { %2895 = vmatprep.subr.bf16.mxu0 %v3784_v23  ;;  %v893_v62 = vsel %vm3799_vm3, %v3520_v35, %v890_v0  ;;  %v894_v46 = vsel %vm3799_vm3, 0, %v892_v42  ;;  %v2902_v35 = vpack.c.bf16 %v1135_v22, %v1134_v47 }
 0x166   : > { %vm2229_vm0 = vcmp.lt.s32.totalorder %v2228_v27, 0  ;;  %3242 = vcosq.f32 %v893_v62  ;;  %v898_v54 = vadd.s32 3, %v894_v46  ;;  %v795_v63 = vand.u32 3, %v794_v40  ;;  %v2243_v46 = vld [vmem:[%s4167_s5] ss:$0 sm:$0xff] }
 0x167   : > { %v772_v11 = vsel %vm2229_vm0, 0, %v2228_v27  ;;  %3244 = vsinq.f32 %v893_v62  ;;  %v1143_v27 = vld [vmem:[#allocation2 + $0x68] sm:$0xff]  ;;  %v1120_v62 = vld [vmem:[%s4169_s7 + $0x30] sm:$0xff] }
 0x168   : > { %v773_v36 = vsub.s32 32, %v772_v11  ;;  %v777_v60 = vsub.s32 4294967266, %v772_v11  ;;  %v774_v38 = vshll.u32 %v765_v9, %v772_v11  ;;  %v899_v21 = vand.u32 3, %v898_v54  ;;  %v1145_v11 = vld [vmem:[#allocation2 + $0x78] sm:$0xff] }
 0x169   : > { %vm800_vm8 = vcmp.eq.s32.totalorder %v795_v63, 2  ;;  %vm797_vm9 = vcmp.eq.s32.totalorder %v795_v63, 0  ;;  %vm796_vm11 = vcmp.lt.s32.totalorder %v795_v63, 2  ;;  %v1128_v63 = vld [vmem:[%s4169_s7 + $0x70] sm:$0xff] }
 0x16a   : > { %v775_v44 = vshrl.u32 %v757_v34, %v773_v36  ;;  %v778_v57 = vadd.s32 127, %v777_v60  ;;  %vm901_vm6 = vcmp.eq.s32.totalorder %v899_v21, 0  ;;  %vm904_vm7 = vcmp.eq.s32.totalorder %v899_v21, 2  ;;  %v1114_v36 = vld [vmem:[%s4169_s7] sm:$0xff]  ;;  %v1115_v60 = vld [vmem:[%s4169_s7 + $0x8] sm:$0xff] }
 0x16b   : > { %vm900_vm10 = vcmp.lt.s32.totalorder %v899_v21, 2 }
 0x16c   : > { %v776_v26 = vor.u32 %v775_v44, %v774_v38  ;;  %v779_v18 = vshll.u32 %v778_v57, 23  ;;  %v1116_v38 = vld [vmem:[%s4169_s7 + $0x10] sm:$0xff]  ;;  %v3840_v44 = vpack.c.bf16 %v1115_v60, %v1114_v36  ;;  %v1117_v57 = vld [vmem:[%s4169_s7 + $0x18] sm:$0xff] }
 0x16d   : > { %v3845_v0 = vpack.c.bf16 %v1117_v57, %v1116_v38  ;;  %v1472_v36 = vld [vmem:[#allocation2 + $0xb8] sm:$0xff]  ;;  %v1473_v38 = vld [vmem:[#allocation2 + $0xc0] sm:$0xff]  ;;  %v1474_v57 = vld [vmem:[#allocation2 + $0xc8] sm:$0xff] }
 0x16e   : > { %v780_v33 = vor.u32 4788187, %v779_v18  ;;  %v783_v52 = vcvt.s32.f32 %v776_v26  ;;  %v1118_v26 = vld [vmem:[%s4169_s7 + $0x20] sm:$0xff]  ;;  %v1119_v18 = vld [vmem:[%s4169_s7 + $0x28] sm:$0xff]  ;;  %2927 = vmatprep.subr.bf16.mxu1 %v3840_v44 }
 0x16f   : > { %2929 = vmatpush3.bf16.msra.mxu1 %v3840_v44  ;;  %v3857_v4 = vpack.c.bf16 %v1119_v18, %v1118_v26  ;;  %v3006_v26 = vpack.c.bf16 %v1474_v57, %v1473_v38  ;;  %v1475_v18 = vld [vmem:[#allocation2 + $0xd0] sm:$0xff] }
 0x170   : > { %v781_v43 = vand.u32 2147483647, %v780_v33  ;;  %v3243_v56 = vpop.eup %3242  ;;  %2931 = vmatprep.subr.bf16.mxu1 %v3845_v0  ;;  %v1121_v33 = vld [vmem:[%s4169_s7 + $0x38] sm:$0xff] }
 0x171   : > { %v3245_v14 = vpop.eup %3244  ;;  %v905_v16 = vxor.u32 2147483648, %v3243_v56 }
 0x172   : > { %v784_v49 = vmul.f32 %v783_v52, %v781_v43  ;;  %v902_v30 = vxor.u32 2147483648, %v3245_v14  ;;  %v3867_v43 = vpack.c.bf16 %v1121_v33, %v1120_v62  ;;  %v1122_v52 = vld [vmem:[%s4169_s7 + $0x40] sm:$0xff]  ;;  %v1476_v62 = vld [vmem:[#allocation2 + $0xd8] sm:$0xff] }
 0x173   : > { %v906_v61 = vsel %vm904_vm7, %v905_v16, %v3245_v14  ;;  %2933 = vmatpush3.bf16.msra.mxu1 %v3845_v0  ;;  %v3010_v33 = vpack.c.bf16 %v1476_v62, %v1475_v18 }
 0x174   : > { %v785_v10 = vxor.u32 2147483648, %v784_v49  ;;  %v903_v31 = vsel %vm901_vm6, %v3243_v56, %v902_v30  ;;  %2935 = vmatprep.subr.bf16.mxu1 %v3857_v4  ;;  %vm2128_vm6 = vcmask 64512  }
 0x175   : > { %v907_v9 = vsel %vm900_vm10, %v903_v31, %v906_v61 }
 0x176   : > { %v786_v8 = vsel %vm703_vm4, %v785_v10, %v784_v49  ;;  %v908_v15 = vsel %vm897_vm13, nan, %v907_v9  ;;  %v3877_v49 = vpack.c.bf16 %v1123_v28, %v1122_v52  ;;  %v1125_v10 = vld [vmem:[%s4169_s7 + $0x58] sm:$0xff]  ;;  %v1477_v52 = vld [vmem:[#allocation2 + $0xe0] sm:$0xff]  ;;  %v1478_v28 = vld [vmem:[#allocation2 + $0xe8] sm:$0xff] }
 0x177   : > { %v789_v12 = vsel %vm702_vm5, %v3527_v39, %v786_v8  ;;  %v1136_v39 = vld [vmem:[#allocation2 + $0x30] sm:$0xff]  ;;  %2937 = vmatpush3.bf16.msra.mxu1 %v3857_v4  ;;  %v3887_v42 = vpack.c.bf16 %v1125_v10, %v1124_v20  ;;  %v1126_v8 = vld [vmem:[%s4169_s7 + $0x60] sm:$0xff]  ;;  %v3014_v20 = vpack.c.bf16 %v1478_v28, %v1477_v52 }
 0x178   : > { %3246 = vcosq.f32 %v789_v12  ;;  %2939 = vmatprep.subr.bf16.mxu1 %v3867_v43  ;;  %v1479_v10 = vld [vmem:[#allocation2 + $0xf0] sm:$0xff] }
 0x179   : > { %3248 = vsinq.f32 %v789_v12  ;;  %v3897_v12 = vpack.c.bf16 %v1127_v45, %v1126_v8  ;;  %v1480_v8 = vld [vmem:[#allocation2 + $0xf8] sm:$0xff] }
 0x17a   : > { %v3018_v45 = vpack.c.bf16 %v1480_v8, %v1479_v10 }
 0x17b   : > { %2941 = vmatpush3.bf16.msra.mxu1 %v3867_v43 }
 0x17c   : > { %2943 = vmatprep.subr.bf16.mxu1 %v3877_v49 }
 0x17f   : > { %2945 = vmatpush3.bf16.msra.mxu1 %v3877_v49 }
 0x180   : > { %2947 = vmatprep.subr.bf16.mxu1 %v3887_v42 }
 0x182   : > { %v3247_v50 = vpop.eup %3246 }
 0x183   : > { %v3249_v48 = vpop.eup %3248  ;;  %v801_v17 = vxor.u32 2147483648, %v3247_v50  ;;  %2949 = vmatpush3.bf16.msra.mxu1 %v3887_v42 }
 0x184   : > { %v798_v1 = vxor.u32 2147483648, %v3249_v48  ;;  %2951 = vmatprep.subr.bf16.mxu1 %v3897_v12 }
 0x185   : > { %v802_v24 = vsel %vm800_vm8, %v801_v17, %v3249_v48  ;;  %v2244_v17 = vld [vmem:[%s4167_s5 + $0x1] ss:$0 sm:$0xff] }
 0x186   : > { %v799_v2 = vsel %vm797_vm9, %v3247_v50, %v798_v1  ;;  %v1129_v50 = vld [vmem:[%s4169_s7 + $0x78] sm:$0xff] }
 0x187   : > { %v803_v37 = vsel %vm796_vm11, %v799_v2, %v802_v24  ;;  %2953 = vmatpush3.bf16.msra.mxu1 %v3897_v12  ;;  %v3936_v48 = vpack.c.bf16 %v1129_v50, %v1128_v63  ;;  %v1584_v50 = vld [vmem:[#allocation2 + $0x120] sm:$0xff] }
 0x188   : > { %v804_v41 = vsel %vm793_vm12, nan, %v803_v37 }
 0x189   : > { %2511 = vmatprep.mubr.msk.f32.mxu0 %vm919_vm14, %v804_v41  ;;  %2955 = vmatprep.subr.bf16.mxu1 %v3936_v48 }
 0x18a   : > { %2512 = vmatmul.mubr.msk.f32.gmra.mrb[6].mxu0 %vm919_vm14, %v908_v15 }
 0x18b   : > { %2518 = vmatprep.mubr.msk.f32.mxu0 %vm391_vm1, %v3455_v3  ;;  %v2906_v3 = vpack.c.bf16 %v1137_v58, %v1136_v39  ;;  %2957 = vmatpush3.bf16.msra.mxu1 %v3936_v48 }
 0x18e   : > { %2519 = vmatmul.mubr.msk.f32.vlgmr.msra.gmra.mrb[4].mxu0 %vm391_vm1, %v3463_v5  ;;  %v2910_v5 = vpack.c.bf16 %v1139_v25, %v1138_v59 }
 0x18f   : > { %2521 = vmatprep.mubr.msk.f32.mxu0 %vm391_vm1, %v3465_v6  ;;  %2897 = vmatpush3.bf16.msra.mxu0 %v3784_v23  ;;  %v2914_v6 = vpack.c.bf16 %v1141_v32, %v1140_v29  ;;  %v1142_v23 = vld [vmem:[#allocation2 + $0x60] sm:$0xff]  ;;  %v1466_v29 = vld [vmem:[#allocation2 + $0x88] sm:$0xff] }
 0x190   : > { %2899 = vmatprep.subr.bf16.mxu0 %v2898_v53  ;;  %v2918_v51 = vpack.c.bf16 %v1143_v27, %v1142_v23  ;;  %v1468_v23 = vld [vmem:[#allocation2 + $0x98] sm:$0xff] }
 0x192   : > { %2522 = vmatmul.mubr.msk.f32.gmra.mrb[6].mxu0 %vm391_vm1, %v3471_v7  ;;  %v1144_v7 = vld [vmem:[#allocation2 + $0x70] sm:$0xff] }
 0x193   : > { %2901 = vmatpush3.bf16.msra.mxu0 %v2898_v53  ;;  %v2922_v34 = vpack.c.bf16 %v1145_v11, %v1144_v7  ;;  %v1470_v7 = vld [vmem:[#allocation2 + $0xa8] sm:$0xff]  ;;  %v1471_v11 = vld [vmem:[#allocation2 + $0xb0] sm:$0xff] }
 0x194   : > { %2903 = vmatprep.subr.bf16.mxu0 %v2902_v35  ;;  %v3002_v60 = vpack.c.bf16 %v1472_v36, %v1471_v11  ;;  %v2246_v36 = vld [vmem:[%s4167_s5 + $0x3] ss:$0 sm:$0xff] }
 0x197   : > { %2905 = vmatpush3.bf16.msra.mxu0 %v2902_v35 }
 0x198   : > { %2907 = vmatprep.subr.bf16.mxu0 %v2906_v3 }
 0x19b   : > { %2909 = vmatpush3.bf16.msra.mxu0 %v2906_v3 }
 0x19c   : > { %2911 = vmatprep.subr.bf16.mxu0 %v2910_v5 }
 0x19f   : > { %2913 = vmatpush3.bf16.msra.mxu0 %v2910_v5  ;;  %v1465_v5 = vld [vmem:[#allocation2 + $0x80] sm:$0xff] }
 0x1a0   : > { %2915 = vmatprep.subr.bf16.mxu0 %v2914_v6  ;;  %v2990_v32 = vpack.c.bf16 %v1466_v29, %v1465_v5 }
 0x1a2   : > { %2991 = vmatprep.subr.bf16.mxu1 %v2990_v32 }
 0x1a3   : > { %2917 = vmatpush3.bf16.msra.mxu0 %v2914_v6  ;;  %v1467_v6 = vld [vmem:[#allocation2 + $0x90] sm:$0xff] }
 0x1a4   : > { %2919 = vmatprep.subr.bf16.mxu0 %v2918_v51  ;;  %v2994_v27 = vpack.c.bf16 %v1468_v23, %v1467_v6 }
 0x1a7   : > { %2921 = vmatpush3.bf16.msra.mxu0 %v2918_v51  ;;  %v1469_v51 = vld [vmem:[#allocation2 + $0xa0] sm:$0xff] }
 0x1a8   : > { %2923 = vmatprep.subr.bf16.mxu0 %v2922_v34 }
 0x1ab   : > { %2925 = vmatpush3.bf16.msra.mxu0 %v2922_v34  ;;  %v2998_v34 = vpack.c.bf16 %v1470_v7, %v1469_v51  ;;  %v2245_v51 = vld [vmem:[%s4167_s5 + $0x2] ss:$0 sm:$0xff] }
 0x1ac   : > { %2959 = vmatprep.subr.bf16.mxu0 %v3840_v44 }
 0x261   : > { %v2520_v13 = vpop.f32.mrb[4].mxu0 }
 0x262   : > { %v1086_v54 = vpop.f32.mrb[5].mxu0  ;;  %v3907_v14 = vadd.f32 %v2520_v13, %v2243_v46  ;;  %v1581_v13 = vld [vmem:[#allocation2 + $0x108] sm:$0xff] }
 0x263   : > { %v3905_v56 = vadd.f32 %v2243_v46, %v1086_v54  ;;  %v1582_v54 = vld [vmem:[#allocation2 + $0x110] sm:$0xff] }
 0x265   : > { %v2523_v40 = vpop.f32.mrb[6].mxu0  ;;  %2556 = vmatprep.mubr.f32.mxu0 %v3905_v56 }
 0x266   : > { %v1096_v21 = vpop.f32.mrb[7].mxu0  ;;  %2557 = vmatmul.mubr.f32.vlgmr.msra.gmra.mrb[8].mxu0 %v3907_v14  ;;  %v3914_v16 = vadd.f32 %v2523_v40, %v2243_v46 }
 0x267   : > { %v3911_v30 = vadd.f32 %v2243_v46, %v1096_v21  ;;  %2961 = vmatpush3.bf16.msra.mxu0 %v3840_v44  ;;  %v1580_v46 = vld [vmem:[#allocation2 + $0x100] sm:$0xff]  ;;  %v1583_v21 = vld [vmem:[#allocation2 + $0x118] sm:$0xff] }
 0x268   : > { %2963 = vmatprep.subr.bf16.mxu0 %v3845_v0  ;;  %v3022_v40 = vpack.c.bf16 %v1581_v13, %v1580_v46  ;;  %v3026_v63 = vpack.c.bf16 %v1583_v21, %v1582_v54 }
 0x269   : > { %2559 = vmatprep.mubr.f32.mxu0 %v3911_v30 }
 0x26a   : > { %2560 = vmatmul.mubr.f32.gmra.mrb[10].mxu0 %v3914_v16 }
 0x26b   : > { %2965 = vmatpush3.bf16.msra.mxu0 %v3845_v0 }
 0x26c   : > { %2967 = vmatprep.subr.bf16.mxu0 %v3857_v4 }
 0x26f   : > { %2969 = vmatpush3.bf16.msra.mxu0 %v3857_v4 }
 0x270   : > { %2971 = vmatprep.subr.bf16.mxu0 %v3867_v43 }
 0x273   : > { %2973 = vmatpush3.bf16.msra.mxu0 %v3867_v43 }
 0x274   : > { %2975 = vmatprep.subr.bf16.mxu0 %v3877_v49 }
 0x277   : > { %2977 = vmatpush3.bf16.msra.mxu0 %v3877_v49 }
 0x278   : > { %2979 = vmatprep.subr.bf16.mxu0 %v3887_v42 }
 0x27b   : > { %2981 = vmatpush3.bf16.msra.mxu0 %v3887_v42 }
 0x27c   : > { %2983 = vmatprep.subr.bf16.mxu0 %v3897_v12 }
 0x27f   : > { %2985 = vmatpush3.bf16.msra.mxu0 %v3897_v12 }
 0x280   : > { %2987 = vmatprep.subr.bf16.mxu0 %v3936_v48 }
 0x283   : > { %2989 = vmatpush3.bf16.msra.mxu0 %v3936_v48 }
 0x284   : > { %3023 = vmatprep.subr.bf16.mxu0 %v3022_v40 }
 0x339   : > { %v2558_v31 = vpop.f32.mrb[8].mxu0 }
 0x33a   : > { %v1217_v61 = vpop.f32.mrb[9].mxu0  ;;  %v1223_v24 = vadd.f32 %v2558_v31, %v2244_v17 }
 0x33b   : > { %v1218_v1 = vadd.f32 %v2244_v17, %v1217_v61  ;;  %v1586_v61 = vld [vmem:[#allocation2 + $0x130] sm:$0xff] }
 0x33d   : > { %v2561_v2 = vpop.f32.mrb[10].mxu0  ;;  %2594 = vmatprep.mubr.f32.mxu1 %v1218_v1 }
 0x33e   : > { %v1227_v9 = vpop.f32.mrb[11].mxu0  ;;  %2595 = vmatmul.mubr.f32.vlgmr.msra.gmra.mrb[0].mxu1 %v1223_v24  ;;  %v1233_v41 = vadd.f32 %v2561_v2, %v2244_v17  ;;  %v1588_v2 = vld [vmem:[#allocation2 + $0x140] sm:$0xff] }
 0x33f   : > { %v1228_v37 = vadd.f32 %v2244_v17, %v1227_v9  ;;  %2993 = vmatpush3.bf16.msra.mxu1 %v2990_v32  ;;  %v1585_v17 = vld [vmem:[#allocation2 + $0x128] sm:$0xff] }
 0x340   : > { %2995 = vmatprep.subr.bf16.mxu1 %v2994_v27  ;;  %v3030_v31 = vpack.c.bf16 %v1585_v17, %v1584_v50  ;;  %v1589_v9 = vld [vmem:[#allocation2 + $0x148] sm:$0xff] }
 0x341   : > { %2597 = vmatprep.mubr.f32.mxu1 %v1228_v37 }
 0x342   : > { %2598 = vmatmul.mubr.f32.gmra.mrb[2].mxu1 %v1233_v41 }
 0x343   : > { %2997 = vmatpush3.bf16.msra.mxu1 %v2994_v27 }
 0x344   : > { %2999 = vmatprep.subr.bf16.mxu1 %v2998_v34 }
 0x347   : > { %3001 = vmatpush3.bf16.msra.mxu1 %v2998_v34 }
 0x348   : > { %3003 = vmatprep.subr.bf16.mxu1 %v3002_v60 }
 0x34b   : > { %3005 = vmatpush3.bf16.msra.mxu1 %v3002_v60 }
 0x34c   : > { %3007 = vmatprep.subr.bf16.mxu1 %v3006_v26 }
 0x34f   : > { %3009 = vmatpush3.bf16.msra.mxu1 %v3006_v26 }
 0x350   : > { %3011 = vmatprep.subr.bf16.mxu1 %v3010_v33 }
 0x353   : > { %3013 = vmatpush3.bf16.msra.mxu1 %v3010_v33 }
 0x354   : > { %3015 = vmatprep.subr.bf16.mxu1 %v3014_v20 }
 0x357   : > { %3017 = vmatpush3.bf16.msra.mxu1 %v3014_v20 }
 0x358   : > { %3019 = vmatprep.subr.bf16.mxu1 %v3018_v45 }
 0x35b   : > { %3021 = vmatpush3.bf16.msra.mxu1 %v3018_v45 }
 0x35c   : > { %3055 = vmatprep.subr.bf16.mxu1 %v3840_v44 }
 0x411   : > { %v2596_v15 = vpop.f32.mrb[0].mxu1 }
 0x412   : > { %v3945_v19 = vsub.f32 %v1223_v24, %v2596_v15  ;;  %v1302_v55 = vpop.f32.mrb[1].mxu1  ;;  %v1591_v15 = vld [vmem:[#allocation2 + $0x158] sm:$0xff] }
 0x413   : > { %v3947_v53 = vsub.f32 %v1218_v1, %v1302_v55  ;;  %v1587_v1 = vld [vmem:[#allocation2 + $0x138] sm:$0xff] }
 0x414   : > { %v1326_v35 = vmul.f32 %v3945_v19, %v3945_v19  ;;  %v3034_v24 = vpack.c.bf16 %v1587_v1, %v1586_v61 }
 0x415   : > { %v1325_v47 = vmul.f32 %v3947_v53, %v3947_v53  ;;  %v2599_v22 = vpop.f32.mrb[2].mxu1 }
 0x416   : > { %v3953_v39 = vsub.f32 %v1233_v41, %v2599_v22  ;;  %v1312_v58 = vpop.f32.mrb[3].mxu1  ;;  %v1590_v41 = vld [vmem:[#allocation2 + $0x150] sm:$0xff]  ;;  %v1593_v22 = vld [vmem:[#allocation2 + $0x168] sm:$0xff] }
 0x417   : > { %v3955_v3 = vsub.f32 %v1228_v37, %v1312_v58  ;;  %2632 = vmatprep.mubr.f32.mxu0 %v1325_v47  ;;  %v3038_v37 = vpack.c.bf16 %v1589_v9, %v1588_v2  ;;  %v3042_v55 = vpack.c.bf16 %v1591_v15, %v1590_v41  ;;  %v1592_v47 = vld [vmem:[#allocation2 + $0x160] sm:$0xff]  ;;  %v1594_v41 = vld [vmem:[#allocation2 + $0x170] sm:$0xff]  ;;  %v1595_v15 = vld [vmem:[#allocation2 + $0x178] sm:$0xff] }
 0x418   : > { %2633 = vmatmul.mubr.f32.vlgmr.msra.gmra.mrb[12].mxu0 %v1326_v35  ;;  %v1328_v25 = vmul.f32 %v3953_v39, %v3953_v39  ;;  %v3046_v35 = vpack.c.bf16 %v1593_v22, %v1592_v47 }
 0x419   : > { %v1327_v59 = vmul.f32 %v3955_v3, %v3955_v3  ;;  %3025 = vmatpush3.bf16.msra.mxu0 %v3022_v40 }
 0x41a   : > { %3027 = vmatprep.subr.bf16.mxu0 %v3026_v63 }
 0x41b   : > { %2635 = vmatprep.mubr.f32.mxu0 %v1327_v59 }
 0x41c   : > { %2636 = vmatmul.mubr.f32.gmra.mrb[14].mxu0 %v1328_v25 }
 0x41d   : > { %3029 = vmatpush3.bf16.msra.mxu0 %v3026_v63 }
 0x41e   : > { %3031 = vmatprep.subr.bf16.mxu0 %v3030_v31 }
 0x421   : > { %3033 = vmatpush3.bf16.msra.mxu0 %v3030_v31 }
 0x422   : > { %3035 = vmatprep.subr.bf16.mxu0 %v3034_v24 }
 0x425   : > { %3037 = vmatpush3.bf16.msra.mxu0 %v3034_v24 }
 0x426   : > { %3039 = vmatprep.subr.bf16.mxu0 %v3038_v37 }
 0x429   : > { %3041 = vmatpush3.bf16.msra.mxu0 %v3038_v37 }
 0x42a   : > { %3043 = vmatprep.subr.bf16.mxu0 %v3042_v55 }
 0x42d   : > { %3045 = vmatpush3.bf16.msra.mxu0 %v3042_v55  ;;  %v3050_v55 = vpack.c.bf16 %v1595_v15, %v1594_v41 }
 0x42e   : > { %3047 = vmatprep.subr.bf16.mxu0 %v3046_v35 }
 0x431   : > { %3049 = vmatpush3.bf16.msra.mxu0 %v3046_v35  ;;  %v2251_v35 = vld [vmem:[%s4167_s5 + $0x4] ss:$0 sm:$0xff] }
 0x432   : > { %3051 = vmatprep.subr.bf16.mxu0 %v3050_v55 }
 0x435   : > { %3053 = vmatpush3.bf16.msra.mxu0 %v3050_v55 }
 0x436   : > { %3087 = vmatprep.subr.bf16.mxu0 %v3840_v44 }
 0x4eb   : > { %v2634_v58 = vpop.f32.mrb[12].mxu0 }
 0x4ec   : > { %v1401_v59 = vadd.f32 1e-05, %v2634_v58  ;;  %v1395_v25 = vpop.f32.mrb[13].mxu0 }
 0x4ed   : > { %v1396_v5 = vadd.f32 1e-05, %v1395_v25 }
 0x4ee   : > { %3250 = vrsqrt.f32 %v1401_v59 }
 0x4ef   : > { %3252 = vrsqrt.f32 %v1396_v5  ;;  %v2637_v29 = vpop.f32.mrb[14].mxu0 }
 0x4f0   : > { %v1411_v32 = vadd.f32 1e-05, %v2637_v29  ;;  %v1405_v6 = vpop.f32.mrb[15].mxu0 }
 0x4f1   : > { %v1406_v23 = vadd.f32 1e-05, %v1405_v6 }
 0x4f2   : > { %3254 = vrsqrt.f32 %v1411_v32 }
 0x4f3   : > { %3256 = vrsqrt.f32 %v1406_v23 }
 0x4f8   : > { %v3251_v27 = vpop.eup %3250 }
 0x4f9   : > { %v3253_v7 = vpop.eup %3252  ;;  %v1419_v11 = vmul.f32 %v3251_v27, %v3945_v19 }
 0x4fa   : > { %v1418_v34 = vmul.f32 %v3253_v7, %v3947_v53 }
 0x4fb   : > { %v1428_v60 = vmul.f32 %v2245_v51, %v1419_v11 }
 0x4fc   : > { %v3255_v38 = vpop.eup %3254  ;;  %v1427_v57 = vmul.f32 %v2245_v51, %v1418_v34 }
 0x4fd   : > { %v3257_v26 = vpop.eup %3256  ;;  %v1437_v18 = vadd.f32 %v2246_v36, %v1428_v60  ;;  %v1421_v62 = vmul.f32 %v3255_v38, %v3953_v39 }
 0x4fe   : > { %v1436_v33 = vadd.f32 %v2246_v36, %v1427_v57  ;;  %v1420_v52 = vmul.f32 %v3257_v26, %v3955_v3 }
 0x4ff   : > { %v1445_v28 = vmin.f32 %v1437_v18, 0.0  ;;  %v1430_v20 = vmul.f32 %v2245_v51, %v1421_v62  ;;  %vm1441_vm14 = vcmp.gt.f32.partialorder %v1437_v18, 0.0  ;;  %v2259_v62 = vld [vmem:[%s4170_s8 + $0x80] sm:$0xff] }
 0x500   : > { %v1444_v10 = vmin.f32 %v1436_v33, 0.0  ;;  %v1429_v19 = vmul.f32 %v2245_v51, %v1420_v52  ;;  %vm1440_vm1 = vcmp.gt.f32.partialorder %v1436_v33, 0.0 }
 0x501   : > { %v1450_v8 = vmul.f32 1.442695, %v1445_v28  ;;  %v1439_v53 = vadd.f32 %v2246_v36, %v1430_v20  ;;  %v2261_v28 = vld [vmem:[%s4170_s8 + $0x90] sm:$0xff]  ;;  %v2262_v20 = vld [vmem:[%s4170_s8 + $0x98] sm:$0xff] }
 0x502   : > { %v1448_v45 = vmul.f32 1.442695, %v1444_v10  ;;  %v1438_v46 = vadd.f32 %v2246_v36, %v1429_v19  ;;  %v3122_v10 = vpack.c.bf16 %v2262_v20, %v2261_v28  ;;  %v2263_v19 = vld [vmem:[%s4170_s8 + $0xa0] sm:$0xff] }
 0x503   : > { %3258 = vpow2.f32 %v1450_v8  ;;  %v1447_v13 = vmin.f32 %v1439_v53, 0.0  ;;  %vm1443_vm0 = vcmp.gt.f32.partialorder %v1439_v53, 0.0  ;;  %v2264_v8 = vld [vmem:[%s4170_s8 + $0xa8] sm:$0xff] }
 0x504   : > { %3260 = vpow2.f32 %v1448_v45  ;;  %v1446_v54 = vmin.f32 %v1438_v46, 0.0  ;;  %vm1442_vm15 = vcmp.gt.f32.partialorder %v1438_v46, 0.0  ;;  %v3126_v45 = vpack.c.bf16 %v2264_v8, %v2263_v19 }
 0x505   : > { %v1454_v40 = vmul.f32 1.442695, %v1447_v13 }
 0x506   : > { %v1452_v21 = vmul.f32 1.442695, %v1446_v54  ;;  %v2267_v54 = vld [vmem:[%s4170_s8 + $0xc0] sm:$0xff] }
 0x507   : > { %3262 = vpow2.f32 %v1454_v40  ;;  %v2268_v40 = vld [vmem:[%s4170_s8 + $0xc8] sm:$0xff] }
 0x508   : > { %3264 = vpow2.f32 %v1452_v21  ;;  %v3134_v21 = vpack.c.bf16 %v2268_v40, %v2267_v54  ;;  %v1918_v40 = vld [vmem:[%s4170_s8 + $0x20] sm:$0xff] }
 0x50d   : > { %v3259_v39 = vpop.eup %3258 }
 0x50e   : > { %v3261_v63 = vpop.eup %3260  ;;  %v2248_v50 = vadd.f32 -1.0, %v3259_v39  ;;  %v2269_v39 = vld [vmem:[%s4170_s8 + $0xd0] sm:$0xff] }
 0x50f   : > { %v2247_v3 = vadd.f32 -1.0, %v3261_v63  ;;  %v2270_v63 = vld [vmem:[%s4170_s8 + $0xd8] sm:$0xff] }
 0x510   : > { %v1461_v1 = vsel %vm1441_vm14, %v1437_v18, %v2248_v50  ;;  %v3138_v50 = vpack.c.bf16 %v2270_v63, %v2269_v39 }
 0x511   : > { %v3263_v17 = vpop.eup %3262  ;;  %v1460_v31 = vsel %vm1440_vm1, %v1436_v33, %v2247_v3  ;;  %v2260_v33 = vld [vmem:[%s4170_s8 + $0x88] sm:$0xff]  ;;  %v2271_v3 = vld [vmem:[%s4170_s8 + $0xe0] sm:$0xff] }
 0x512   : > { %v3265_v61 = vpop.eup %3264  ;;  %2670 = vmatprep.mubr.f32.mxu1 %v1460_v31  ;;  %v2250_v24 = vadd.f32 -1.0, %v3263_v17  ;;  %v3118_v52 = vpack.c.bf16 %v2260_v33, %v2259_v62  ;;  %v2272_v17 = vld [vmem:[%s4170_s8 + $0xe8] sm:$0xff] }
 0x513   : > { %2671 = vmatmul.mubr.f32.vlgmr.msra.gmra.mrb[4].mxu1 %v1461_v1  ;;  %v2249_v2 = vadd.f32 -1.0, %v3265_v61  ;;  %v3142_v31 = vpack.c.bf16 %v2272_v17, %v2271_v3  ;;  %v2273_v61 = vld [vmem:[%s4170_s8 + $0xf0] sm:$0xff]  ;;  %v2274_v1 = vld [vmem:[%s4170_s8 + $0xf8] sm:$0xff] }
 0x514   : > { %3057 = vmatpush3.bf16.msra.mxu1 %v3840_v44  ;;  %v1463_v37 = vsel %vm1443_vm0, %v1439_v53, %v2250_v24  ;;  %v2265_v53 = vld [vmem:[%s4170_s8 + $0xb0] sm:$0xff]  ;;  %v3146_v24 = vpack.c.bf16 %v2274_v1, %v2273_v61  ;;  %v1922_v1 = vld [vmem:[%s4170_s8 + $0x40] sm:$0xff] }
 0x515   : > { %v1462_v9 = vsel %vm1442_vm15, %v1438_v46, %v2249_v2  ;;  %3059 = vmatprep.subr.bf16.mxu1 %v3845_v0  ;;  %v2266_v46 = vld [vmem:[%s4170_s8 + $0xb8] sm:$0xff]  ;;  %v1914_v2 = vld [vmem:[%s4170_s8] sm:$0xff]  ;;  %v1920_v17 = vld [vmem:[%s4170_s8 + $0x30] sm:$0xff] }
 0x516   : > { %2673 = vmatprep.mubr.f32.mxu1 %v1462_v9  ;;  %v3130_v13 = vpack.c.bf16 %v2266_v46, %v2265_v53  ;;  %v1915_v9 = vld [vmem:[%s4170_s8 + $0x8] sm:$0xff] }
 0x517   : > { %2674 = vmatmul.mubr.f32.gmra.mrb[6].mxu1 %v1463_v37  ;;  %v3150_v37 = vpack.c.bf16 %v1915_v9, %v1914_v2  ;;  %v1924_v9 = vld [vmem:[%s4170_s8 + $0x50] sm:$0xff] }
 0x518   : > { %3061 = vmatpush3.bf16.msra.mxu1 %v3845_v0 }
 0x519   : > { %3063 = vmatprep.subr.bf16.mxu1 %v3857_v4 }
 0x51c   : > { %3065 = vmatpush3.bf16.msra.mxu1 %v3857_v4 }
 0x51d   : > { %3067 = vmatprep.subr.bf16.mxu1 %v3867_v43 }
 0x520   : > { %3069 = vmatpush3.bf16.msra.mxu1 %v3867_v43 }
 0x521   : > { %3071 = vmatprep.subr.bf16.mxu1 %v3877_v49 }
 0x524   : > { %3073 = vmatpush3.bf16.msra.mxu1 %v3877_v49 }
 0x525   : > { %3075 = vmatprep.subr.bf16.mxu1 %v3887_v42 }
 0x528   : > { %3077 = vmatpush3.bf16.msra.mxu1 %v3887_v42 }
 0x529   : > { %3079 = vmatprep.subr.bf16.mxu1 %v3897_v12 }
 0x52c   : > { %3081 = vmatpush3.bf16.msra.mxu1 %v3897_v12 }
 0x52d   : > { %3083 = vmatprep.subr.bf16.mxu1 %v3936_v48 }
 0x530   : > { %3085 = vmatpush3.bf16.msra.mxu1 %v3936_v48 }
 0x531   : > { %3119 = vmatprep.subr.bf16.mxu1 %v3118_v52 }
 0x5e6   : > { %v2672_v47 = vpop.f32.mrb[4].mxu1 }
 0x5e7   : > { %v1567_v22 = vadd.f32 %v2672_v47, %v3907_v14  ;;  %v1547_v58 = vpop.f32.mrb[5].mxu1 }
 0x5e8   : > { %v1566_v59 = vadd.f32 %v1547_v58, %v3905_v56 }
 0x5e9   : > { %v3995_v29 = vadd.f32 %v2251_v35, %v1567_v22 }
 0x5ea   : > { %v3993_v25 = vadd.f32 %v2251_v35, %v1566_v59  ;;  %v2675_v5 = vpop.f32.mrb[6].mxu1 }
 0x5eb   : > { %v1569_v32 = vadd.f32 %v2675_v5, %v3914_v16  ;;  %v1557_v6 = vpop.f32.mrb[7].mxu1 }
 0x5ec   : > { %v1568_v23 = vadd.f32 %v1557_v6, %v3911_v30  ;;  %2708 = vmatprep.mubr.f32.mxu0 %v3993_v25 }
 0x5ed   : > { %2709 = vmatmul.mubr.f32.vlgmr.msra.gmra.mrb[16].mxu0 %v3995_v29  ;;  %v4004_v27 = vadd.f32 %v2251_v35, %v1569_v32  ;;  %v2253_v32 = vld [vmem:[%s4167_s5 + $0x6] ss:$0 sm:$0xff] }
 0x5ee   : > { %v4001_v14 = vadd.f32 %v2251_v35, %v1568_v23  ;;  %3089 = vmatpush3.bf16.msra.mxu0 %v3840_v44  ;;  %v2252_v44 = vld [vmem:[%s4167_s5 + $0x5] ss:$0 sm:$0xff] }
 0x5ef   : > { %3091 = vmatprep.subr.bf16.mxu0 %v3845_v0 }
 0x5f0   : > { %2711 = vmatprep.mubr.f32.mxu0 %v4001_v14 }
 0x5f1   : > { %2712 = vmatmul.mubr.f32.gmra.mrb[18].mxu0 %v4004_v27 }
 0x5f2   : > { %3093 = vmatpush3.bf16.msra.mxu0 %v3845_v0 }
 0x5f3   : > { %3095 = vmatprep.subr.bf16.mxu0 %v3857_v4 }
 0x5f6   : > { %3097 = vmatpush3.bf16.msra.mxu0 %v3857_v4 }
 0x5f7   : > { %3099 = vmatprep.subr.bf16.mxu0 %v3867_v43 }
 0x5fa   : > { %3101 = vmatpush3.bf16.msra.mxu0 %v3867_v43 }
 0x5fb   : > { %3103 = vmatprep.subr.bf16.mxu0 %v3877_v49 }
 0x5fe   : > { %3105 = vmatpush3.bf16.msra.mxu0 %v3877_v49 }
 0x5ff   : > { %3107 = vmatprep.subr.bf16.mxu0 %v3887_v42 }
 0x602   : > { %3109 = vmatpush3.bf16.msra.mxu0 %v3887_v42 }
 0x603   : > { %3111 = vmatprep.subr.bf16.mxu0 %v3897_v12 }
 0x606   : > { %3113 = vmatpush3.bf16.msra.mxu0 %v3897_v12 }
 0x607   : > { %3115 = vmatprep.subr.bf16.mxu0 %v3936_v48 }
 0x60a   : > { %3117 = vmatpush3.bf16.msra.mxu0 %v3936_v48 }
 0x6c0   : > { %v2710_v0 = vpop.f32.mrb[16].mxu0 }
 0x6c1   : > { %v1667_v4 = vpop.f32.mrb[17].mxu0  ;;  %v1673_v49 = vadd.f32 %v2710_v0, %v2252_v44  ;;  %v2254_v0 = vld [vmem:[%s4167_s5 + $0x7] ss:$0 sm:$0xff] }
 0x6c2   : > { %v1668_v43 = vadd.f32 %v2252_v44, %v1667_v4 }
 0x6c4   : > { %v2713_v56 = vpop.f32.mrb[18].mxu0  ;;  %2746 = vmatprep.mubr.f32.mxu1 %v1668_v43 }
 0x6c5   : > { %v1677_v30 = vpop.f32.mrb[19].mxu0  ;;  %2747 = vmatmul.mubr.f32.vlgmr.msra.gmra.mrb[8].mxu1 %v1673_v49  ;;  %v1683_v16 = vadd.f32 %v2713_v56, %v2252_v44 }
 0x6c6   : > { %v1678_v42 = vadd.f32 %v2252_v44, %v1677_v30  ;;  %3121 = vmatpush3.bf16.msra.mxu1 %v3118_v52 }
 0x6c7   : > { %3123 = vmatprep.subr.bf16.mxu1 %v3122_v10 }
 0x6c8   : > { %2749 = vmatprep.mubr.f32.mxu1 %v1678_v42 }
 0x6c9   : > { %2750 = vmatmul.mubr.f32.gmra.mrb[10].mxu1 %v1683_v16 }
 0x6ca   : > { %3125 = vmatpush3.bf16.msra.mxu1 %v3122_v10  ;;  %v1917_v10 = vld [vmem:[%s4170_s8 + $0x18] sm:$0xff] }
 0x6cb   : > { %3127 = vmatprep.subr.bf16.mxu1 %v3126_v45 }
 0x6ce   : > { %3129 = vmatpush3.bf16.msra.mxu1 %v3126_v45 }
 0x6cf   : > { %3131 = vmatprep.subr.bf16.mxu1 %v3130_v13 }
 0x6d2   : > { %3133 = vmatpush3.bf16.msra.mxu1 %v3130_v13 }
 0x6d3   : > { %3135 = vmatprep.subr.bf16.mxu1 %v3134_v21 }
 0x6d6   : > { %3137 = vmatpush3.bf16.msra.mxu1 %v3134_v21  ;;  %v1919_v21 = vld [vmem:[%s4170_s8 + $0x28] sm:$0xff] }
 0x6d7   : > { %3139 = vmatprep.subr.bf16.mxu1 %v3138_v50 }
 0x6da   : > { %3141 = vmatpush3.bf16.msra.mxu1 %v3138_v50  ;;  %v3158_v50 = vpack.c.bf16 %v1919_v21, %v1918_v40 }
 0x6db   : > { %3143 = vmatprep.subr.bf16.mxu1 %v3142_v31 }
 0x6de   : > { %3145 = vmatpush3.bf16.msra.mxu1 %v3142_v31  ;;  %v1921_v31 = vld [vmem:[%s4170_s8 + $0x38] sm:$0xff] }
 0x6df   : > { %3147 = vmatprep.subr.bf16.mxu1 %v3146_v24  ;;  %v3162_v61 = vpack.c.bf16 %v1921_v31, %v1920_v17 }
 0x6e2   : > { %3149 = vmatpush3.bf16.msra.mxu1 %v3146_v24  ;;  %v1923_v24 = vld [vmem:[%s4170_s8 + $0x48] sm:$0xff] }
 0x6e3   : > { %3151 = vmatprep.subr.bf16.mxu1 %v3150_v37  ;;  %v3166_v2 = vpack.c.bf16 %v1923_v24, %v1922_v1 }
 0x798   : > { %v2748_v12 = vpop.f32.mrb[8].mxu1 }
 0x799   : > { %v4025_v51 = vsub.f32 %v1673_v49, %v2748_v12  ;;  %v1752_v48 = vpop.f32.mrb[9].mxu1 }
 0x79a   : > { %v4027_v7 = vsub.f32 %v1668_v43, %v1752_v48 }
 0x79b   : > { %v1776_v36 = vmul.f32 %v4025_v51, %v4025_v51 }
 0x79c   : > { %v1775_v11 = vmul.f32 %v4027_v7, %v4027_v7  ;;  %v2751_v34 = vpop.f32.mrb[10].mxu1 }
 0x79d   : > { %v4033_v60 = vsub.f32 %v1683_v16, %v2751_v34  ;;  %v1762_v38 = vpop.f32.mrb[11].mxu1 }
 0x79e   : > { %v4035_v57 = vsub.f32 %v1678_v42, %v1762_v38  ;;  %2784 = vmatprep.mubr.f32.mxu0 %v1775_v11 }
 0x79f   : > { %2785 = vmatmul.mubr.f32.vlgmr.msra.gmra.mrb[20].mxu0 %v1776_v36  ;;  %v1778_v18 = vmul.f32 %v4033_v60, %v4033_v60 }
 0x7a0   : > { %v1777_v26 = vmul.f32 %v4035_v57, %v4035_v57 }
 0x7a2   : > { %2787 = vmatprep.mubr.f32.mxu0 %v1777_v26 }
 0x7a3   : > { %2788 = vmatmul.mubr.f32.gmra.mrb[22].mxu0 %v1778_v18 }
 0x872   : > { %v2786_v41 = vpop.f32.mrb[20].mxu0 }
 0x873   : > { %v1851_v15 = vadd.f32 1e-05, %v2786_v41  ;;  %v1845_v55 = vpop.f32.mrb[21].mxu0  ;;  %v1926_v41 = vld [vmem:[%s4170_s8 + $0x60] sm:$0xff] }
 0x874   : > { %v1846_v47 = vadd.f32 1e-05, %v1845_v55 }
 0x875   : > { %3266 = vrsqrt.f32 %v1851_v15  ;;  %v1927_v15 = vld [vmem:[%s4170_s8 + $0x68] sm:$0xff] }
 0x876   : > { %3268 = vrsqrt.f32 %v1846_v47  ;;  %v2789_v22 = vpop.f32.mrb[22].mxu0  ;;  %v3174_v55 = vpack.c.bf16 %v1927_v15, %v1926_v41  ;;  %v1928_v47 = vld [vmem:[%s4170_s8 + $0x70] sm:$0xff] }
 0x877   : > { %v1861_v35 = vadd.f32 1e-05, %v2789_v22  ;;  %v1855_v58 = vpop.f32.mrb[23].mxu0  ;;  %v1929_v22 = vld [vmem:[%s4170_s8 + $0x78] sm:$0xff] }
 0x878   : > { %v1856_v59 = vadd.f32 1e-05, %v1855_v58  ;;  %v2275_v58 = vld [vmem:[%s4171_s9] ss:$0 sm:$0xff] }
 0x879   : > { %3270 = vrsqrt.f32 %v1861_v35  ;;  %v3178_v35 = vpack.c.bf16 %v1929_v22, %v1928_v47 }
 0x87a   : > { %3272 = vrsqrt.f32 %v1856_v59 }
 0x87f   : > { %v3267_v5 = vpop.eup %3266 }
 0x880   : > { %v3269_v6 = vpop.eup %3268  ;;  %v1869_v23 = vmul.f32 %v3267_v5, %v4025_v51 }
 0x881   : > { %v1868_v44 = vmul.f32 %v3269_v6, %v4027_v7 }
 0x882   : > { %v1878_v4 = vmul.f32 %v2253_v32, %v1869_v23 }
 0x883   : > { %v3271_v43 = vpop.eup %3270  ;;  %v1877_v49 = vmul.f32 %v2253_v32, %v1868_v44 }
 0x884   : > { %v3273_v56 = vpop.eup %3272  ;;  %v1887_v30 = vadd.f32 %v2254_v0, %v1878_v4  ;;  %v1871_v42 = vmul.f32 %v3271_v43, %v4033_v60 }
 0x885   : > { %v1886_v16 = vadd.f32 %v2254_v0, %v1877_v49  ;;  %v1870_v12 = vmul.f32 %v3273_v56, %v4035_v57  ;;  %v1916_v57 = vld [vmem:[%s4170_s8 + $0x10] sm:$0xff] }
 0x886   : > { %v1895_v48 = vmin.f32 %v1887_v30, 0.0  ;;  %v1880_v11 = vmul.f32 %v2253_v32, %v1871_v42  ;;  %vm1891_vm3 = vcmp.gt.f32.partialorder %v1887_v30, 0.0  ;;  %v3154_v45 = vpack.c.bf16 %v1917_v10, %v1916_v57 }
 0x887   : > { %v1894_v34 = vmin.f32 %v1886_v16, 0.0  ;;  %v1879_v51 = vmul.f32 %v2253_v32, %v1870_v12  ;;  %vm1890_vm2 = vcmp.gt.f32.partialorder %v1886_v16, 0.0 }
 0x888   : > { %v1900_v36 = vmul.f32 1.442695, %v1895_v48  ;;  %v1889_v7 = vadd.f32 %v2254_v0, %v1880_v11 }
 0x889   : > { %v1898_v38 = vmul.f32 1.442695, %v1894_v34  ;;  %v1888_v26 = vadd.f32 %v2254_v0, %v1879_v51 }
 0x88a   : > { %3274 = vpow2.f32 %v1900_v36  ;;  %v1897_v18 = vmin.f32 %v1889_v7, 0.0  ;;  %vm1893_vm5 = vcmp.gt.f32.partialorder %v1889_v7, 0.0 }
 0x88b   : > { %3276 = vpow2.f32 %v1898_v38  ;;  %v1896_v62 = vmin.f32 %v1888_v26, 0.0  ;;  %vm1892_vm4 = vcmp.gt.f32.partialorder %v1888_v26, 0.0 }
 0x88c   : > { %v1904_v33 = vmul.f32 1.442695, %v1897_v18 }
 0x88d   : > { %v1902_v52 = vmul.f32 1.442695, %v1896_v62 }
 0x88e   : > { %3278 = vpow2.f32 %v1904_v33 }
 0x88f   : > { %3280 = vpow2.f32 %v1902_v52 }
 0x894   : > { %v3275_v60 = vpop.eup %3274 }
 0x895   : > { %v3277_v28 = vpop.eup %3276  ;;  %v2256_v20 = vadd.f32 -1.0, %v3275_v60 }
 0x896   : > { %v2255_v19 = vadd.f32 -1.0, %v3277_v28 }
 0x897   : > { %v1911_v13 = vsel %vm1891_vm3, %v1887_v30, %v2256_v20 }
 0x898   : > { %v3279_v8 = vpop.eup %3278  ;;  %v1910_v53 = vsel %vm1890_vm2, %v1886_v16, %v2255_v19 }
 0x899   : > { %v3281_v46 = vpop.eup %3280  ;;  %2822 = vmatprep.mubr.f32.mxu1 %v1910_v53  ;;  %v2258_v54 = vadd.f32 -1.0, %v3279_v8 }
 0x89a   : > { %2823 = vmatmul.mubr.f32.vlgmr.msra.gmra.mrb[12].mxu1 %v1911_v13  ;;  %v2257_v39 = vadd.f32 -1.0, %v3281_v46 }
 0x89b   : > { %3153 = vmatpush3.bf16.msra.mxu1 %v3150_v37  ;;  %v1913_v3 = vsel %vm1893_vm5, %v1889_v7, %v2258_v54 }
 0x89c   : > { %v1912_v63 = vsel %vm1892_vm4, %v1888_v26, %v2257_v39  ;;  %3155 = vmatprep.subr.bf16.mxu1 %v3154_v45 }
 0x89d   : > { %2825 = vmatprep.mubr.f32.mxu1 %v1912_v63 }
 0x89e   : > { %2826 = vmatmul.mubr.f32.gmra.mrb[14].mxu1 %v1913_v3 }
 0x89f   : > { %3157 = vmatpush3.bf16.msra.mxu1 %v3154_v45  ;;  %2860 = vmatprep.mubr.f32.mxu1 %v3993_v25  ;;  %v1925_v25 = vld [vmem:[%s4170_s8 + $0x58] sm:$0xff] }
 0x8a0   : > { %3159 = vmatprep.subr.bf16.mxu1 %v3158_v50  ;;  %v3170_v37 = vpack.c.bf16 %v1925_v25, %v1924_v9 }
 0x8a3   : > { %3161 = vmatpush3.bf16.msra.mxu1 %v3158_v50 }
 0x8a4   : > { %3163 = vmatprep.subr.bf16.mxu1 %v3162_v61 }
 0x8a7   : > { %3165 = vmatpush3.bf16.msra.mxu1 %v3162_v61 }
 0x8a8   : > { %3167 = vmatprep.subr.bf16.mxu1 %v3166_v2 }
 0x8ab   : > { %3169 = vmatpush3.bf16.msra.mxu1 %v3166_v2 }
 0x8ac   : > { %3171 = vmatprep.subr.bf16.mxu1 %v3170_v37 }
 0x8af   : > { %3173 = vmatpush3.bf16.msra.mxu1 %v3170_v37 }
 0x8b0   : > { %3175 = vmatprep.subr.bf16.mxu1 %v3174_v55 }
 0x8b3   : > { %3177 = vmatpush3.bf16.msra.mxu1 %v3174_v55 }
 0x8b4   : > { %3179 = vmatprep.subr.bf16.mxu1 %v3178_v35 }
 0x8b7   : > { %3181 = vmatpush3.bf16.msra.mxu1 %v3178_v35 }
 0x8ba   : > { %2861 = vmatmul.mubr.f32.vlgmr.msra.gmra.mrb[12].mxu1 %v3995_v29 }
 0x8bb   : > { %2863 = vmatprep.mubr.f32.mxu1 %v4001_v14 }
 0x8be   : > { %2864 = vmatmul.mubr.f32.gmra.mrb[14].mxu1 %v4004_v27 }
 0x98d   : > { %v2862_v59 = vpop.f32.mrb[12].mxu1 }
 0x98e   : > { %v2098_v5 = vpop.f32.mrb[13].mxu1  ;;  %v2125_v6 = vadd.f32 %v2862_v59, %v2275_v58 }
 0x98f   : > { %v2124_v32 = vadd.f32 %v2275_v58, %v2098_v5 }
 0x990   : > { %2130 = vst.msk [vmem:[%s376_s24 + $0x8] sm:$0xff] %vm2128_vm6, %v2125_v6 }
 0x991   : > { %2129 = vst.msk [vmem:[%s376_s24] sm:$0xff] %vm2128_vm6, %v2124_v32  ;;  %v2865_v29 = vpop.f32.mrb[14].mxu1 }
 0x992   : > { %v2108_v14 = vpop.f32.mrb[15].mxu1  ;;  %v2127_v27 = vadd.f32 %v2865_v29, %v2275_v58 }
 0x993   : > { %v2126_v23 = vadd.f32 %v2275_v58, %v2108_v14 }
 0x994   : > { %2132 = vst.msk [vmem:[%s376_s24 + $0x18] sm:$0xff] %vm2128_vm6, %v2127_v27 }
 0x995   : > { %2131 = vst.msk [vmem:[%s376_s24 + $0x10] sm:$0xff] %vm2128_vm6, %v2126_v23 }
 0x996 PF: > { %s21_s13 = sadd.s32 1, %s3320_s13  }
 0x997   : > { %p18_p3 = scmp.ge.s32.totalorder %s21_s13, 4  }
 0x999   :  { %20 = sbr.rel (!%p18_p3) target bundleno = 1 (0x1), region = 98 }
 0x9a0   :  { %2155 = vsyncpa [#allocation3], 1 }
 0x9a1   :  { %2157 = vsyncpa [#allocation3 + $0x1], 1 }

</bundles_post_ra>
